<compile_context>
chip_gen: v5e
topology: v5e:2x2
jax: 0.10.0
libtpu: 0.0.40
codegen_flags: <defaults>
</compile_context>

<pallas_src>
import jax
import jax.numpy as jnp
from jax import lax
from jax.experimental import pallas as pl
from jax.experimental.pallas import tpu as pltpu

BN_EPS = 1e-5
LANE = 128


def _round_up(x, m):
    return (x + m - 1) // m * m


def _pad2(a, rows, cols):
    a = jnp.asarray(a, jnp.float32)
    return jnp.pad(a, ((0, rows - a.shape[0]), (0, cols - a.shape[1])))


def _full_spec(shape):
    nd = len(shape)
    return pl.BlockSpec(shape, lambda i, _nd=nd: (0,) * _nd)


# ---------------------------------------------------------------------------
# Fused GIN forward kernel (entire network, single pallas_call, fully unrolled)
# ---------------------------------------------------------------------------
def _gin_fused_kernel(eps_ref,                        # SMEM [L] f32
                      a_ref, x_ref, sn_ref,           # VMEM inputs
                      ew_ref, eb_ref,
                      w1_ref, b1_ref, g1_ref, be1_ref,
                      w2_ref, b2_ref, g2_ref, be2_ref,
                      lwcat_ref, lbsum_ref,
                      pw1_ref, pb1_ref, pw2_ref, pb2_ref,
                      out_ref, score_ref):            # outputs
    num_layers = w1_ref.shape[0]
    n_nodes = a_ref.shape[0]
    inv_n = 1.0 / n_nodes

    a = a_ref[...]                                    # [N, N] bf16 (0/1 exact)
    sn = sn_ref[...]                                  # [N, 1]  f32

    def batch_norm(z, gamma, beta):
        # One-pass batch statistics: sum(z) and sum(z*z) are independent
        # reductions (parallel XLUs); var = E[z^2] - mu^2.  All math f32.
        s1 = jnp.sum(z, axis=0, keepdims=True)
        s2 = jnp.sum(z * z, axis=0, keepdims=True)
        mu = s1 * inv_n
        var = s2 * inv_n - mu * mu
        return gamma * (z - mu) * lax.rsqrt(var + BN_EPS) + beta

    # node embedding:  h = x @ W_emb^T + b_emb   (bf16 MXU operands, f32 accum)
    h = jnp.dot(x_ref[...].astype(jnp.bfloat16), ew_ref[...],
                preferred_element_type=jnp.float32) + eb_ref[...]

    pooled = [jnp.sum(h, axis=0, keepdims=True)]      # readout of hidden_rep[0]

    for l in range(num_layers):                       # fully unrolled (static l)
        h_in = h
        # sum aggregation:  neigh = A @ h
        neigh = jnp.dot(a, h.astype(jnp.bfloat16),
                        preferred_element_type=jnp.float32)
        z = (1.0 + eps_ref[l]) * h + neigh
        # MLP:  Linear -> BatchNorm(batch stats) -> ReLU -> Linear
        z = jnp.dot(z.astype(jnp.bfloat16), w1_ref[l],
                    preferred_element_type=jnp.float32) + b1_ref[l]
        z = jnp.maximum(batch_norm(z, g1_ref[l], be1_ref[l]), 0.0)
        z = jnp.dot(z.astype(jnp.bfloat16), w2_ref[l],
                    preferred_element_type=jnp.float32) + b2_ref[l]
        # graph norm (kept for general snorm_n semantics)
        z = z * sn
        # node batch norm + ReLU + residual  (dropout p=0.0 -> identity)
        z = jnp.maximum(batch_norm(z, g2_ref[l], be2_ref[l]), 0.0)
        h = h_in + z
        pooled.append(jnp.sum(h, axis=0, keepdims=True))

    # Hoisted readout: ONE matmul  [1,(L+1)*HP] @ [(L+1)*HP, CP]  (+ summed bias)
    pooled_cat = jnp.concatenate(pooled, axis=1).astype(jnp.bfloat16)
    score_ref[...] = jnp.dot(pooled_cat, lwcat_ref[...],
                             preferred_element_type=jnp.float32) + lbsum_ref[...]

    # vector_over_layer + projection head: Linear -> ReLU -> Linear
    vec = pooled[0]
    for p in pooled[1:]:
        vec = vec + p
    z = jnp.dot(vec.astype(jnp.bfloat16), pw1_ref[...],
                preferred_element_type=jnp.float32) + pb1_ref[...]
    z = jnp.maximum(z, 0.0)
    out_ref[...] = jnp.dot(z.astype(jnp.bfloat16), pw2_ref[...],
                           preferred_element_type=jnp.float32) + pb2_ref[...]


def _gin_forward_impl(A, x, snorm, packed):
    N = A.shape[0]
    DP, HP = packed["emb_wT"].shape
    CP = packed["lin_wT_cat"].shape[1]
    x_p = _pad2(x, N, DP)

    args = (packed["eps"],
            A.astype(jnp.bfloat16), x_p, snorm.astype(jnp.float32),
            packed["emb_wT"], packed["emb_b"],
            packed["w1T"], packed["b1"], packed["g1"], packed["be1"],
            packed["w2T"], packed["b2"], packed["g2"], packed["be2"],
            packed["lin_wT_cat"], packed["lin_b_sum"],
            packed["proj_w1T"], packed["proj_b1"],
            packed["proj_w2T"], packed["proj_b2"])

    in_specs = ([pl.BlockSpec(memory_space=pltpu.MemorySpace.SMEM)]
                + [_full_spec(a.shape) for a in args[1:]])

    out, score = pl.pallas_call(
        _gin_fused_kernel,
        out_shape=(jax.ShapeDtypeStruct((1, HP), jnp.float32),
                   jax.ShapeDtypeStruct((1, CP), jnp.float32)),
        grid=(1,),
        in_specs=in_specs,
        out_specs=(_full_spec((1, HP)), _full_spec((1, CP))),
        compiler_params=pltpu.CompilerParams(
            dimension_semantics=("arbitrary",)),
    )(*args)
    return out, score


gin_forward = jax.jit(_gin_forward_impl)


# ---------------------------------------------------------------------------
# Parameter init (deterministic, synthetic, PyTorch layout) + host-side packing
# ---------------------------------------------------------------------------
def init_raw_params(key, input_dim, hidden_dim, num_classes, num_layers):
    n_linear = 1 + 2 * num_layers + (num_layers + 1) + 2
    keys = iter(jax.random.split(key, 2 * n_linear))

    def lin_init(in_d, out_d):
        w = jax.random.normal(next(keys), (out_d, in_d), jnp.float32) / jnp.sqrt(in_d)
        b = 0.01 * jax.random.normal(next(keys), (out_d,), jnp.float32)
        return w, b

    raw = {}
    raw["emb_w"], raw["emb_b"] = lin_init(input_dim, hidden_dim)
    raw["layers"] = []
    for _ in range(num_layers):
        w1, b1 = lin_init(hidden_dim, hidden_dim)
        w2, b2 = lin_init(hidden_dim, hidden_dim)
        raw["layers"].append(dict(
            eps=jnp.float32(0.0),                        # learn_eps, init 0
            w1=w1, b1=b1,
            g1=jnp.ones((hidden_dim,), jnp.float32),     # BN defaults
            be1=jnp.zeros((hidden_dim,), jnp.float32),
            w2=w2, b2=b2,
            g2=jnp.ones((hidden_dim,), jnp.float32),
            be2=jnp.zeros((hidden_dim,), jnp.float32),
        ))
    raw["lin_w"], raw["lin_b"] = [], []
    for _ in range(num_layers + 1):
        w, b = lin_init(hidden_dim, num_classes)
        raw["lin_w"].append(w)
        raw["lin_b"].append(b)
    raw["proj_w1"], raw["proj_b1"] = lin_init(hidden_dim, hidden_dim)
    raw["proj_w2"], raw["proj_b2"] = lin_init(hidden_dim, hidden_dim)
    return raw


def pack_params(raw, input_dim, hidden_dim, num_classes):
    """Pre-transpose, zero-pad feature dims to the 128-lane width, stack the
    per-layer weights and K-concatenate the readout linears once on the host.
    Matmul weights are stored bf16 (MXU-native on v5e/v6e/v7x; halves the
    weight DMA); biases/BN params stay f32.  Zero padding is mathematically
    transparent for this network."""
    DP = _round_up(input_dim, LANE)
    HP = _round_up(hidden_dim, LANE)
    CP = _round_up(num_classes, LANE)

    def wT(w, in_p, out_p):       # PyTorch [out, in] -> padded [in_p, out_p] bf16
        return _pad2(jnp.asarray(w).T, in_p, out_p).astype(jnp.bfloat16)

    def row(v, out_p):            # [out] -> padded [1, out_p] f32
        return _pad2(jnp.asarray(v).reshape(1, -1), 1, out_p)

    layers = raw["layers"]
    lin_wT_cat = jnp.concatenate([wT(w, HP, CP) for w in raw["lin_w"]], axis=0)
    lin_b_sum = sum(row(b, CP) for b in raw["lin_b"])
    return dict(
        eps=jnp.stack([lp["eps"] for lp in layers]).astype(jnp.float32),
        emb_wT=wT(raw["emb_w"], DP, HP), emb_b=row(raw["emb_b"], HP),
        w1T=jnp.stack([wT(lp["w1"], HP, HP) for lp in layers]),
        b1=jnp.stack([row(lp["b1"], HP) for lp in layers]),
        g1=jnp.stack([row(lp["g1"], HP) for lp in layers]),
        be1=jnp.stack([row(lp["be1"], HP) for lp in layers]),
        w2T=jnp.stack([wT(lp["w2"], HP, HP) for lp in layers]),
        b2=jnp.stack([row(lp["b2"], HP) for lp in layers]),
        g2=jnp.stack([row(lp["g2"], HP) for lp in layers]),
        be2=jnp.stack([row(lp["be2"], HP) for lp in layers]),
        lin_wT_cat=lin_wT_cat, lin_b_sum=lin_b_sum,
        proj_w1T=wT(raw["proj_w1"], HP, HP), proj_b1=row(raw["proj_b1"], HP),
        proj_w2T=wT(raw["proj_w2"], HP, HP), proj_b2=row(raw["proj_b2"], HP),
    )


# ---------------------------------------------------------------------------
# Pure-JAX reference (unpadded, full f32) for correctness checking
# ---------------------------------------------------------------------------
def gin_forward_ref(A, x, snorm, raw):
    def lin(v, w, b):
        return v @ w.T + b

    def bn(z, gamma, beta):
        mu = z.mean(axis=0, keepdims=True)
        var = ((z - mu) ** 2).mean(axis=0, keepdims=True)
        return gamma * (z - mu) * lax.rsqrt(var + BN_EPS) + beta

    h = lin(x, raw["emb_w"], raw["emb_b"])
    hidden_rep = [h]
    for lp in raw["layers"]:
        h_in = h
        neigh = A @ h
        z = (1.0 + lp["eps"]) * h + neigh
        z = lin(z, lp["w1"], lp["b1"])
        z = jnp.maximum(bn(z, lp["g1"], lp["be1"]), 0.0)
        z = lin(z, lp["w2"], lp["b2"])
        z = z * snorm
        z = jnp.maximum(bn(z, lp["g2"], lp["be2"]), 0.0)
        h = h_in + z
        hidden_rep.append(h)

    vec = jnp.zeros((1, h.shape[1]), jnp.float32)
    score = jnp.zeros((1, raw["lin_w"][0].shape[0]), jnp.float32)
    for i, hr in enumerate(hidden_rep):
        pooled = jnp.sum(hr, axis=0, keepdims=True)
        vec = vec + pooled
        score = score + lin(pooled, raw["lin_w"][i], raw["lin_b"][i])

    z = jnp.maximum(lin(vec, raw["proj_w1"], raw["proj_b1"]), 0.0)
    z = lin(z, raw["proj_w2"], raw["proj_b2"])
    return z, score


if __name__ == "__main__":
    N = 32            # nodes in the graph
    input_dim = 16
    hidden_dim = 32
    num_classes = 8
    num_layers = 4

    key = jax.random.PRNGKey(0)
    k_x, k_a, k_p = jax.random.split(key, 3)

    # node features
    x = jax.random.normal(k_x, (N, input_dim), jnp.float32)

    # random symmetric adjacency without self loops
    u = jax.random.uniform(k_a, (N, N))
    A = (u < 0.2).astype(jnp.float32)
    A = jnp.maximum(A, A.T) * (1.0 - jnp.eye(N, dtype=jnp.float32))

    # snorm_n = 1/sqrt(num_nodes) per node  (benchmarking-gnns convention)
    snorm = jnp.full((N, 1), 1.0 / jnp.sqrt(N), jnp.float32)

    raw = init_raw_params(k_p, input_dim, hidden_dim, num_classes, num_layers)
    packed = pack_params(raw, input_dim, hidden_dim, num_classes)

    out_p, score_p = gin_forward(A, x, snorm, packed)
    jax.block_until_ready(out_p)
    jax.block_until_ready(score_p)

    out = out_p[:, :hidden_dim]
    score = score_p[:, :num_classes]
    assert out.shape == (1, hidden_dim)
    assert score.shape == (1, num_classes)

    out_r, score_r = gin_forward_ref(A, x, snorm, raw)

    # Kernel uses bf16 MXU operands (f32 accumulation) per the perf review, so
    # compare max abs error normalized by the reference magnitude; a structural
    # bug would give O(1) error, bf16 rounding gives ~1e-2.
    def rel_err(a, b):
        return float(jnp.max(jnp.abs(a - b)) / (jnp.max(jnp.abs(b)) + 1e-6))

    e_out = rel_err(out, out_r)
    e_score = rel_err(score, score_r)
    assert e_out < 5e-2, "out mismatch, normalized max err = %g" % e_out
    assert e_score < 5e-2, "score mismatch, normalized max err = %g" % e_score

    print("KERNEL_OK")
</pallas_src>

<mosaic_0001>
module attributes {stable_mosaic.version = 11 : i64} {
  func.func @_gin_fused_kernel(%arg0: i32, %arg1: memref<4xf32, #tpu.memory_space<smem>>, %arg2: memref<32x32xbf16, #tpu.memory_space<vmem>>, %arg3: memref<32x128xf32, #tpu.memory_space<vmem>>, %arg4: memref<32x1xf32, #tpu.memory_space<vmem>>, %arg5: memref<128x128xbf16, #tpu.memory_space<vmem>>, %arg6: memref<1x128xf32, #tpu.memory_space<vmem>>, %arg7: memref<4x128x128xbf16, #tpu.memory_space<vmem>>, %arg8: memref<4x1x128xf32, #tpu.memory_space<vmem>>, %arg9: memref<4x1x128xf32, #tpu.memory_space<vmem>>, %arg10: memref<4x1x128xf32, #tpu.memory_space<vmem>>, %arg11: memref<4x128x128xbf16, #tpu.memory_space<vmem>>, %arg12: memref<4x1x128xf32, #tpu.memory_space<vmem>>, %arg13: memref<4x1x128xf32, #tpu.memory_space<vmem>>, %arg14: memref<4x1x128xf32, #tpu.memory_space<vmem>>, %arg15: memref<640x128xbf16, #tpu.memory_space<vmem>>, %arg16: memref<1x128xf32, #tpu.memory_space<vmem>>, %arg17: memref<128x128xbf16, #tpu.memory_space<vmem>>, %arg18: memref<1x128xf32, #tpu.memory_space<vmem>>, %arg19: memref<128x128xbf16, #tpu.memory_space<vmem>>, %arg20: memref<1x128xf32, #tpu.memory_space<vmem>>, %arg21: memref<1x128xf32, #tpu.memory_space<vmem>>, %arg22: memref<1x128xf32, #tpu.memory_space<vmem>>) attributes {dimension_semantics = [#tpu.dimension_semantics<arbitrary>], iteration_bounds = array<i64: 1>, scalar_prefetch = 0 : i64, scratch_operands = 0 : i64, tpu.core_type = #tpu.core_type<tc>, window_params = [{transform_indices = @transform_0, window_bounds = array<i64: 4>}, {pipeline_mode = #tpu.pipeline_mode<synchronous>, transform_indices = @transform_1, window_bounds = array<i64: 32, 32>}, {pipeline_mode = #tpu.pipeline_mode<synchronous>, transform_indices = @transform_2, window_bounds = array<i64: 32, 128>}, {pipeline_mode = #tpu.pipeline_mode<synchronous>, transform_indices = @transform_3, window_bounds = array<i64: 32, 1>}, {pipeline_mode = #tpu.pipeline_mode<synchronous>, transform_indices = @transform_4, window_bounds = array<i64: 128, 128>}, {pipeline_mode = #tpu.pipeline_mode<synchronous>, transform_indices = @transform_5, window_bounds = array<i64: 1, 128>}, {pipeline_mode = #tpu.pipeline_mode<synchronous>, transform_indices = @transform_6, window_bounds = array<i64: 4, 128, 128>}, {pipeline_mode = #tpu.pipeline_mode<synchronous>, transform_indices = @transform_7, window_bounds = array<i64: 4, 1, 128>}, {pipeline_mode = #tpu.pipeline_mode<synchronous>, transform_indices = @transform_8, window_bounds = array<i64: 4, 1, 128>}, {pipeline_mode = #tpu.pipeline_mode<synchronous>, transform_indices = @transform_9, window_bounds = array<i64: 4, 1, 128>}, {pipeline_mode = #tpu.pipeline_mode<synchronous>, transform_indices = @transform_10, window_bounds = array<i64: 4, 128, 128>}, {pipeline_mode = #tpu.pipeline_mode<synchronous>, transform_indices = @transform_11, window_bounds = array<i64: 4, 1, 128>}, {pipeline_mode = #tpu.pipeline_mode<synchronous>, transform_indices = @transform_12, window_bounds = array<i64: 4, 1, 128>}, {pipeline_mode = #tpu.pipeline_mode<synchronous>, transform_indices = @transform_13, window_bounds = array<i64: 4, 1, 128>}, {pipeline_mode = #tpu.pipeline_mode<synchronous>, transform_indices = @transform_14, window_bounds = array<i64: 640, 128>}, {pipeline_mode = #tpu.pipeline_mode<synchronous>, transform_indices = @transform_15, window_bounds = array<i64: 1, 128>}, {pipeline_mode = #tpu.pipeline_mode<synchronous>, transform_indices = @transform_16, window_bounds = array<i64: 128, 128>}, {pipeline_mode = #tpu.pipeline_mode<synchronous>, transform_indices = @transform_17, window_bounds = array<i64: 1, 128>}, {pipeline_mode = #tpu.pipeline_mode<synchronous>, transform_indices = @transform_18, window_bounds = array<i64: 128, 128>}, {pipeline_mode = #tpu.pipeline_mode<synchronous>, transform_indices = @transform_19, window_bounds = array<i64: 1, 128>}, {pipeline_mode = #tpu.pipeline_mode<synchronous>, transform_indices = @transform_20, window_bounds = array<i64: 1, 128>}, {pipeline_mode = #tpu.pipeline_mode<synchronous>, transform_indices = @transform_21, window_bounds = array<i64: 1, 128>}]} {
    %c0 = arith.constant 0 : index
    %c0_0 = arith.constant 0 : index
    %0 = vector.load %arg2[%c0, %c0_0] : memref<32x32xbf16, #tpu.memory_space<vmem>>, vector<32x32xbf16>
    %c0_1 = arith.constant 0 : index
    %c0_2 = arith.constant 0 : index
    %1 = vector.load %arg4[%c0_1, %c0_2] : memref<32x1xf32, #tpu.memory_space<vmem>>, vector<32x1xf32>
    %c0_3 = arith.constant 0 : index
    %c0_4 = arith.constant 0 : index
    %2 = vector.load %arg3[%c0_3, %c0_4] : memref<32x128xf32, #tpu.memory_space<vmem>>, vector<32x128xf32>
    %3 = arith.truncf %2 : vector<32x128xf32> to vector<32x128xbf16>
    %c0_5 = arith.constant 0 : index
    %c0_6 = arith.constant 0 : index
    %4 = vector.load %arg5[%c0_5, %c0_6] : memref<128x128xbf16, #tpu.memory_space<vmem>>, vector<128x128xbf16>
    %cst = arith.constant dense<0.000000e+00> : vector<32x128xf32>
    %5 = tpu.matmul %3, %4, %cst {dimension_numbers = #tpu.dot_dimension_numbers<[1], [0], [0], [1], [0, 0, 1, 1], [], []>} : vector<32x128xbf16>, vector<128x128xbf16>, vector<32x128xf32> -> vector<32x128xf32>
    %c0_7 = arith.constant 0 : index
    %c0_8 = arith.constant 0 : index
    %6 = vector.load %arg6[%c0_7, %c0_8] : memref<1x128xf32, #tpu.memory_space<vmem>>, vector<1x128xf32>
    %7 = vector.broadcast %6 : vector<1x128xf32> to vector<32x128xf32>
    %8 = arith.addf %5, %7 : vector<32x128xf32>
    %cst_9 = arith.constant dense<0.000000e+00> : vector<128xf32>
    %9 = vector.multi_reduction <add>, %8, %cst_9 [0] : vector<32x128xf32> to vector<128xf32>
    %10 = vector.shape_cast %9 : vector<128xf32> to vector<1x128xf32>
    %11 = arith.truncf %8 : vector<32x128xf32> to vector<32x128xbf16>
    %cst_10 = arith.constant dense<0.000000e+00> : vector<32x128xf32>
    %12 = tpu.matmul %0, %11, %cst_10 {dimension_numbers = #tpu.dot_dimension_numbers<[1], [0], [0], [1], [0, 0, 1, 1], [], []>} : vector<32x32xbf16>, vector<32x128xbf16>, vector<32x128xf32> -> vector<32x128xf32>
    %c0_11 = arith.constant 0 : index
    %13 = memref.load %arg1[%c0_11] : memref<4xf32, #tpu.memory_space<smem>>
    %cst_12 = arith.constant 1.000000e+00 : f32
    %14 = arith.addf %cst_12, %13 : f32
    %15 = vector.broadcast %14 : f32 to vector<32x128xf32>
    %16 = arith.mulf %15, %8 : vector<32x128xf32>
    %17 = arith.addf %16, %12 : vector<32x128xf32>
    %18 = arith.truncf %17 : vector<32x128xf32> to vector<32x128xbf16>
    %c0_13 = arith.constant 0 : index
    %c0_14 = arith.constant 0 : index
    %c0_15 = arith.constant 0 : index
    %19 = vector.load %arg7[%c0_13, %c0_14, %c0_15] : memref<4x128x128xbf16, #tpu.memory_space<vmem>>, vector<1x128x128xbf16>
    %20 = vector.shape_cast %19 : vector<1x128x128xbf16> to vector<128x128xbf16>
    %cst_16 = arith.constant dense<0.000000e+00> : vector<32x128xf32>
    %21 = tpu.matmul %18, %20, %cst_16 {dimension_numbers = #tpu.dot_dimension_numbers<[1], [0], [0], [1], [0, 0, 1, 1], [], []>} : vector<32x128xbf16>, vector<128x128xbf16>, vector<32x128xf32> -> vector<32x128xf32>
    %c0_17 = arith.constant 0 : index
    %c0_18 = arith.constant 0 : index
    %c0_19 = arith.constant 0 : index
    %22 = vector.load %arg8[%c0_17, %c0_18, %c0_19] : memref<4x1x128xf32, #tpu.memory_space<vmem>>, vector<1x1x128xf32>
    %23 = vector.shape_cast %22 : vector<1x1x128xf32> to vector<1x128xf32>
    %24 = vector.broadcast %23 : vector<1x128xf32> to vector<32x128xf32>
    %25 = arith.addf %21, %24 : vector<32x128xf32>
    %c0_20 = arith.constant 0 : index
    %c0_21 = arith.constant 0 : index
    %c0_22 = arith.constant 0 : index
    %26 = vector.load %arg9[%c0_20, %c0_21, %c0_22] : memref<4x1x128xf32, #tpu.memory_space<vmem>>, vector<1x1x128xf32>
    %27 = vector.shape_cast %26 : vector<1x1x128xf32> to vector<1x128xf32>
    %c0_23 = arith.constant 0 : index
    %c0_24 = arith.constant 0 : index
    %c0_25 = arith.constant 0 : index
    %28 = vector.load %arg10[%c0_23, %c0_24, %c0_25] : memref<4x1x128xf32, #tpu.memory_space<vmem>>, vector<1x1x128xf32>
    %29 = vector.shape_cast %28 : vector<1x1x128xf32> to vector<1x128xf32>
    %cst_26 = arith.constant dense<0.000000e+00> : vector<128xf32>
    %30 = vector.multi_reduction <add>, %25, %cst_26 [0] : vector<32x128xf32> to vector<128xf32>
    %31 = vector.shape_cast %30 : vector<128xf32> to vector<1x128xf32>
    %32 = arith.mulf %25, %25 : vector<32x128xf32>
    %cst_27 = arith.constant dense<0.000000e+00> : vector<128xf32>
    %33 = vector.multi_reduction <add>, %32, %cst_27 [0] : vector<32x128xf32> to vector<128xf32>
    %34 = vector.shape_cast %33 : vector<128xf32> to vector<1x128xf32>
    %cst_28 = arith.constant 3.125000e-02 : f32
    %35 = vector.broadcast %cst_28 : f32 to vector<1x128xf32>
    %36 = arith.mulf %31, %35 : vector<1x128xf32>
    %cst_29 = arith.constant 3.125000e-02 : f32
    %37 = vector.broadcast %cst_29 : f32 to vector<1x128xf32>
    %38 = arith.mulf %34, %37 : vector<1x128xf32>
    %39 = arith.mulf %36, %36 : vector<1x128xf32>
    %40 = arith.subf %38, %39 : vector<1x128xf32>
    %41 = vector.broadcast %36 : vector<1x128xf32> to vector<32x128xf32>
    %42 = arith.subf %25, %41 : vector<32x128xf32>
    %43 = vector.broadcast %27 : vector<1x128xf32> to vector<32x128xf32>
    %44 = arith.mulf %43, %42 : vector<32x128xf32>
    %cst_30 = arith.constant 9.99999974E-6 : f32
    %45 = vector.broadcast %cst_30 : f32 to vector<1x128xf32>
    %46 = arith.addf %40, %45 : vector<1x128xf32>
    %47 = math.rsqrt %46 : vector<1x128xf32>
    %48 = vector.broadcast %47 : vector<1x128xf32> to vector<32x128xf32>
    %49 = arith.mulf %44, %48 : vector<32x128xf32>
    %50 = vector.broadcast %29 : vector<1x128xf32> to vector<32x128xf32>
    %51 = arith.addf %49, %50 : vector<32x128xf32>
    %cst_31 = arith.constant 0.000000e+00 : f32
    %52 = vector.broadcast %cst_31 : f32 to vector<32x128xf32>
    %53 = arith.maximumf %51, %52 : vector<32x128xf32>
    %54 = arith.truncf %53 : vector<32x128xf32> to vector<32x128xbf16>
    %c0_32 = arith.constant 0 : index
    %c0_33 = arith.constant 0 : index
    %c0_34 = arith.constant 0 : index
    %55 = vector.load %arg11[%c0_32, %c0_33, %c0_34] : memref<4x128x128xbf16, #tpu.memory_space<vmem>>, vector<1x128x128xbf16>
    %56 = vector.shape_cast %55 : vector<1x128x128xbf16> to vector<128x128xbf16>
    %cst_35 = arith.constant dense<0.000000e+00> : vector<32x128xf32>
    %57 = tpu.matmul %54, %56, %cst_35 {dimension_numbers = #tpu.dot_dimension_numbers<[1], [0], [0], [1], [0, 0, 1, 1], [], []>} : vector<32x128xbf16>, vector<128x128xbf16>, vector<32x128xf32> -> vector<32x128xf32>
    %c0_36 = arith.constant 0 : index
    %c0_37 = arith.constant 0 : index
    %c0_38 = arith.constant 0 : index
    %58 = vector.load %arg12[%c0_36, %c0_37, %c0_38] : memref<4x1x128xf32, #tpu.memory_space<vmem>>, vector<1x1x128xf32>
    %59 = vector.shape_cast %58 : vector<1x1x128xf32> to vector<1x128xf32>
    %60 = vector.broadcast %59 : vector<1x128xf32> to vector<32x128xf32>
    %61 = arith.addf %57, %60 : vector<32x128xf32>
    %62 = vector.broadcast %1 : vector<32x1xf32> to vector<32x128xf32>
    %63 = arith.mulf %61, %62 : vector<32x128xf32>
    %c0_39 = arith.constant 0 : index
    %c0_40 = arith.constant 0 : index
    %c0_41 = arith.constant 0 : index
    %64 = vector.load %arg13[%c0_39, %c0_40, %c0_41] : memref<4x1x128xf32, #tpu.memory_space<vmem>>, vector<1x1x128xf32>
    %65 = vector.shape_cast %64 : vector<1x1x128xf32> to vector<1x128xf32>
    %c0_42 = arith.constant 0 : index
    %c0_43 = arith.constant 0 : index
    %c0_44 = arith.constant 0 : index
    %66 = vector.load %arg14[%c0_42, %c0_43, %c0_44] : memref<4x1x128xf32, #tpu.memory_space<vmem>>, vector<1x1x128xf32>
    %67 = vector.shape_cast %66 : vector<1x1x128xf32> to vector<1x128xf32>
    %cst_45 = arith.constant dense<0.000000e+00> : vector<128xf32>
    %68 = vector.multi_reduction <add>, %63, %cst_45 [0] : vector<32x128xf32> to vector<128xf32>
    %69 = vector.shape_cast %68 : vector<128xf32> to vector<1x128xf32>
    %70 = arith.mulf %63, %63 : vector<32x128xf32>
    %cst_46 = arith.constant dense<0.000000e+00> : vector<128xf32>
    %71 = vector.multi_reduction <add>, %70, %cst_46 [0] : vector<32x128xf32> to vector<128xf32>
    %72 = vector.shape_cast %71 : vector<128xf32> to vector<1x128xf32>
    %cst_47 = arith.constant 3.125000e-02 : f32
    %73 = vector.broadcast %cst_47 : f32 to vector<1x128xf32>
    %74 = arith.mulf %69, %73 : vector<1x128xf32>
    %cst_48 = arith.constant 3.125000e-02 : f32
    %75 = vector.broadcast %cst_48 : f32 to vector<1x128xf32>
    %76 = arith.mulf %72, %75 : vector<1x128xf32>
    %77 = arith.mulf %74, %74 : vector<1x128xf32>
    %78 = arith.subf %76, %77 : vector<1x128xf32>
    %79 = vector.broadcast %74 : vector<1x128xf32> to vector<32x128xf32>
    %80 = arith.subf %63, %79 : vector<32x128xf32>
    %81 = vector.broadcast %65 : vector<1x128xf32> to vector<32x128xf32>
    %82 = arith.mulf %81, %80 : vector<32x128xf32>
    %cst_49 = arith.constant 9.99999974E-6 : f32
    %83 = vector.broadcast %cst_49 : f32 to vector<1x128xf32>
    %84 = arith.addf %78, %83 : vector<1x128xf32>
    %85 = math.rsqrt %84 : vector<1x128xf32>
    %86 = vector.broadcast %85 : vector<1x128xf32> to vector<32x128xf32>
    %87 = arith.mulf %82, %86 : vector<32x128xf32>
    %88 = vector.broadcast %67 : vector<1x128xf32> to vector<32x128xf32>
    %89 = arith.addf %87, %88 : vector<32x128xf32>
    %cst_50 = arith.constant 0.000000e+00 : f32
    %90 = vector.broadcast %cst_50 : f32 to vector<32x128xf32>
    %91 = arith.maximumf %89, %90 : vector<32x128xf32>
    %92 = arith.addf %8, %91 : vector<32x128xf32>
    %cst_51 = arith.constant dense<0.000000e+00> : vector<128xf32>
    %93 = vector.multi_reduction <add>, %92, %cst_51 [0] : vector<32x128xf32> to vector<128xf32>
    %94 = vector.shape_cast %93 : vector<128xf32> to vector<1x128xf32>
    %95 = arith.truncf %92 : vector<32x128xf32> to vector<32x128xbf16>
    %cst_52 = arith.constant dense<0.000000e+00> : vector<32x128xf32>
    %96 = tpu.matmul %0, %95, %cst_52 {dimension_numbers = #tpu.dot_dimension_numbers<[1], [0], [0], [1], [0, 0, 1, 1], [], []>} : vector<32x32xbf16>, vector<32x128xbf16>, vector<32x128xf32> -> vector<32x128xf32>
    %c1 = arith.constant 1 : index
    %97 = memref.load %arg1[%c1] : memref<4xf32, #tpu.memory_space<smem>>
    %cst_53 = arith.constant 1.000000e+00 : f32
    %98 = arith.addf %cst_53, %97 : f32
    %99 = vector.broadcast %98 : f32 to vector<32x128xf32>
    %100 = arith.mulf %99, %92 : vector<32x128xf32>
    %101 = arith.addf %100, %96 : vector<32x128xf32>
    %102 = arith.truncf %101 : vector<32x128xf32> to vector<32x128xbf16>
    %c1_54 = arith.constant 1 : index
    %c0_55 = arith.constant 0 : index
    %c0_56 = arith.constant 0 : index
    %103 = vector.load %arg7[%c1_54, %c0_55, %c0_56] : memref<4x128x128xbf16, #tpu.memory_space<vmem>>, vector<1x128x128xbf16>
    %104 = vector.shape_cast %103 : vector<1x128x128xbf16> to vector<128x128xbf16>
    %cst_57 = arith.constant dense<0.000000e+00> : vector<32x128xf32>
    %105 = tpu.matmul %102, %104, %cst_57 {dimension_numbers = #tpu.dot_dimension_numbers<[1], [0], [0], [1], [0, 0, 1, 1], [], []>} : vector<32x128xbf16>, vector<128x128xbf16>, vector<32x128xf32> -> vector<32x128xf32>
    %c1_58 = arith.constant 1 : index
    %c0_59 = arith.constant 0 : index
    %c0_60 = arith.constant 0 : index
    %106 = vector.load %arg8[%c1_58, %c0_59, %c0_60] : memref<4x1x128xf32, #tpu.memory_space<vmem>>, vector<1x1x128xf32>
    %107 = vector.shape_cast %106 : vector<1x1x128xf32> to vector<1x128xf32>
    %108 = vector.broadcast %107 : vector<1x128xf32> to vector<32x128xf32>
    %109 = arith.addf %105, %108 : vector<32x128xf32>
    %c1_61 = arith.constant 1 : index
    %c0_62 = arith.constant 0 : index
    %c0_63 = arith.constant 0 : index
    %110 = vector.load %arg9[%c1_61, %c0_62, %c0_63] : memref<4x1x128xf32, #tpu.memory_space<vmem>>, vector<1x1x128xf32>
    %111 = vector.shape_cast %110 : vector<1x1x128xf32> to vector<1x128xf32>
    %c1_64 = arith.constant 1 : index
    %c0_65 = arith.constant 0 : index
    %c0_66 = arith.constant 0 : index
    %112 = vector.load %arg10[%c1_64, %c0_65, %c0_66] : memref<4x1x128xf32, #tpu.memory_space<vmem>>, vector<1x1x128xf32>
    %113 = vector.shape_cast %112 : vector<1x1x128xf32> to vector<1x128xf32>
    %cst_67 = arith.constant dense<0.000000e+00> : vector<128xf32>
    %114 = vector.multi_reduction <add>, %109, %cst_67 [0] : vector<32x128xf32> to vector<128xf32>
    %115 = vector.shape_cast %114 : vector<128xf32> to vector<1x128xf32>
    %116 = arith.mulf %109, %109 : vector<32x128xf32>
    %cst_68 = arith.constant dense<0.000000e+00> : vector<128xf32>
    %117 = vector.multi_reduction <add>, %116, %cst_68 [0] : vector<32x128xf32> to vector<128xf32>
    %118 = vector.shape_cast %117 : vector<128xf32> to vector<1x128xf32>
    %cst_69 = arith.constant 3.125000e-02 : f32
    %119 = vector.broadcast %cst_69 : f32 to vector<1x128xf32>
    %120 = arith.mulf %115, %119 : vector<1x128xf32>
    %cst_70 = arith.constant 3.125000e-02 : f32
    %121 = vector.broadcast %cst_70 : f32 to vector<1x128xf32>
    %122 = arith.mulf %118, %121 : vector<1x128xf32>
    %123 = arith.mulf %120, %120 : vector<1x128xf32>
    %124 = arith.subf %122, %123 : vector<1x128xf32>
    %125 = vector.broadcast %120 : vector<1x128xf32> to vector<32x128xf32>
    %126 = arith.subf %109, %125 : vector<32x128xf32>
    %127 = vector.broadcast %111 : vector<1x128xf32> to vector<32x128xf32>
    %128 = arith.mulf %127, %126 : vector<32x128xf32>
    %cst_71 = arith.constant 9.99999974E-6 : f32
    %129 = vector.broadcast %cst_71 : f32 to vector<1x128xf32>
    %130 = arith.addf %124, %129 : vector<1x128xf32>
    %131 = math.rsqrt %130 : vector<1x128xf32>
    %132 = vector.broadcast %131 : vector<1x128xf32> to vector<32x128xf32>
    %133 = arith.mulf %128, %132 : vector<32x128xf32>
    %134 = vector.broadcast %113 : vector<1x128xf32> to vector<32x128xf32>
    %135 = arith.addf %133, %134 : vector<32x128xf32>
    %cst_72 = arith.constant 0.000000e+00 : f32
    %136 = vector.broadcast %cst_72 : f32 to vector<32x128xf32>
    %137 = arith.maximumf %135, %136 : vector<32x128xf32>
    %138 = arith.truncf %137 : vector<32x128xf32> to vector<32x128xbf16>
    %c1_73 = arith.constant 1 : index
    %c0_74 = arith.constant 0 : index
    %c0_75 = arith.constant 0 : index
    %139 = vector.load %arg11[%c1_73, %c0_74, %c0_75] : memref<4x128x128xbf16, #tpu.memory_space<vmem>>, vector<1x128x128xbf16>
    %140 = vector.shape_cast %139 : vector<1x128x128xbf16> to vector<128x128xbf16>
    %cst_76 = arith.constant dense<0.000000e+00> : vector<32x128xf32>
    %141 = tpu.matmul %138, %140, %cst_76 {dimension_numbers = #tpu.dot_dimension_numbers<[1], [0], [0], [1], [0, 0, 1, 1], [], []>} : vector<32x128xbf16>, vector<128x128xbf16>, vector<32x128xf32> -> vector<32x128xf32>
    %c1_77 = arith.constant 1 : index
    %c0_78 = arith.constant 0 : index
    %c0_79 = arith.constant 0 : index
    %142 = vector.load %arg12[%c1_77, %c0_78, %c0_79] : memref<4x1x128xf32, #tpu.memory_space<vmem>>, vector<1x1x128xf32>
    %143 = vector.shape_cast %142 : vector<1x1x128xf32> to vector<1x128xf32>
    %144 = vector.broadcast %143 : vector<1x128xf32> to vector<32x128xf32>
    %145 = arith.addf %141, %144 : vector<32x128xf32>
    %146 = vector.broadcast %1 : vector<32x1xf32> to vector<32x128xf32>
    %147 = arith.mulf %145, %146 : vector<32x128xf32>
    %c1_80 = arith.constant 1 : index
    %c0_81 = arith.constant 0 : index
    %c0_82 = arith.constant 0 : index
    %148 = vector.load %arg13[%c1_80, %c0_81, %c0_82] : memref<4x1x128xf32, #tpu.memory_space<vmem>>, vector<1x1x128xf32>
    %149 = vector.shape_cast %148 : vector<1x1x128xf32> to vector<1x128xf32>
    %c1_83 = arith.constant 1 : index
    %c0_84 = arith.constant 0 : index
    %c0_85 = arith.constant 0 : index
    %150 = vector.load %arg14[%c1_83, %c0_84, %c0_85] : memref<4x1x128xf32, #tpu.memory_space<vmem>>, vector<1x1x128xf32>
    %151 = vector.shape_cast %150 : vector<1x1x128xf32> to vector<1x128xf32>
    %cst_86 = arith.constant dense<0.000000e+00> : vector<128xf32>
    %152 = vector.multi_reduction <add>, %147, %cst_86 [0] : vector<32x128xf32> to vector<128xf32>
    %153 = vector.shape_cast %152 : vector<128xf32> to vector<1x128xf32>
    %154 = arith.mulf %147, %147 : vector<32x128xf32>
    %cst_87 = arith.constant dense<0.000000e+00> : vector<128xf32>
    %155 = vector.multi_reduction <add>, %154, %cst_87 [0] : vector<32x128xf32> to vector<128xf32>
    %156 = vector.shape_cast %155 : vector<128xf32> to vector<1x128xf32>
    %cst_88 = arith.constant 3.125000e-02 : f32
    %157 = vector.broadcast %cst_88 : f32 to vector<1x128xf32>
    %158 = arith.mulf %153, %157 : vector<1x128xf32>
    %cst_89 = arith.constant 3.125000e-02 : f32
    %159 = vector.broadcast %cst_89 : f32 to vector<1x128xf32>
    %160 = arith.mulf %156, %159 : vector<1x128xf32>
    %161 = arith.mulf %158, %158 : vector<1x128xf32>
    %162 = arith.subf %160, %161 : vector<1x128xf32>
    %163 = vector.broadcast %158 : vector<1x128xf32> to vector<32x128xf32>
    %164 = arith.subf %147, %163 : vector<32x128xf32>
    %165 = vector.broadcast %149 : vector<1x128xf32> to vector<32x128xf32>
    %166 = arith.mulf %165, %164 : vector<32x128xf32>
    %cst_90 = arith.constant 9.99999974E-6 : f32
    %167 = vector.broadcast %cst_90 : f32 to vector<1x128xf32>
    %168 = arith.addf %162, %167 : vector<1x128xf32>
    %169 = math.rsqrt %168 : vector<1x128xf32>
    %170 = vector.broadcast %169 : vector<1x128xf32> to vector<32x128xf32>
    %171 = arith.mulf %166, %170 : vector<32x128xf32>
    %172 = vector.broadcast %151 : vector<1x128xf32> to vector<32x128xf32>
    %173 = arith.addf %171, %172 : vector<32x128xf32>
    %cst_91 = arith.constant 0.000000e+00 : f32
    %174 = vector.broadcast %cst_91 : f32 to vector<32x128xf32>
    %175 = arith.maximumf %173, %174 : vector<32x128xf32>
    %176 = arith.addf %92, %175 : vector<32x128xf32>
    %cst_92 = arith.constant dense<0.000000e+00> : vector<128xf32>
    %177 = vector.multi_reduction <add>, %176, %cst_92 [0] : vector<32x128xf32> to vector<128xf32>
    %178 = vector.shape_cast %177 : vector<128xf32> to vector<1x128xf32>
    %179 = arith.truncf %176 : vector<32x128xf32> to vector<32x128xbf16>
    %cst_93 = arith.constant dense<0.000000e+00> : vector<32x128xf32>
    %180 = tpu.matmul %0, %179, %cst_93 {dimension_numbers = #tpu.dot_dimension_numbers<[1], [0], [0], [1], [0, 0, 1, 1], [], []>} : vector<32x32xbf16>, vector<32x128xbf16>, vector<32x128xf32> -> vector<32x128xf32>
    %c2 = arith.constant 2 : index
    %181 = memref.load %arg1[%c2] : memref<4xf32, #tpu.memory_space<smem>>
    %cst_94 = arith.constant 1.000000e+00 : f32
    %182 = arith.addf %cst_94, %181 : f32
    %183 = vector.broadcast %182 : f32 to vector<32x128xf32>
    %184 = arith.mulf %183, %176 : vector<32x128xf32>
    %185 = arith.addf %184, %180 : vector<32x128xf32>
    %186 = arith.truncf %185 : vector<32x128xf32> to vector<32x128xbf16>
    %c2_95 = arith.constant 2 : index
    %c0_96 = arith.constant 0 : index
    %c0_97 = arith.constant 0 : index
    %187 = vector.load %arg7[%c2_95, %c0_96, %c0_97] : memref<4x128x128xbf16, #tpu.memory_space<vmem>>, vector<1x128x128xbf16>
    %188 = vector.shape_cast %187 : vector<1x128x128xbf16> to vector<128x128xbf16>
    %cst_98 = arith.constant dense<0.000000e+00> : vector<32x128xf32>
    %189 = tpu.matmul %186, %188, %cst_98 {dimension_numbers = #tpu.dot_dimension_numbers<[1], [0], [0], [1], [0, 0, 1, 1], [], []>} : vector<32x128xbf16>, vector<128x128xbf16>, vector<32x128xf32> -> vector<32x128xf32>
    %c2_99 = arith.constant 2 : index
    %c0_100 = arith.constant 0 : index
    %c0_101 = arith.constant 0 : index
    %190 = vector.load %arg8[%c2_99, %c0_100, %c0_101] : memref<4x1x128xf32, #tpu.memory_space<vmem>>, vector<1x1x128xf32>
    %191 = vector.shape_cast %190 : vector<1x1x128xf32> to vector<1x128xf32>
    %192 = vector.broadcast %191 : vector<1x128xf32> to vector<32x128xf32>
    %193 = arith.addf %189, %192 : vector<32x128xf32>
    %c2_102 = arith.constant 2 : index
    %c0_103 = arith.constant 0 : index
    %c0_104 = arith.constant 0 : index
    %194 = vector.load %arg9[%c2_102, %c0_103, %c0_104] : memref<4x1x128xf32, #tpu.memory_space<vmem>>, vector<1x1x128xf32>
    %195 = vector.shape_cast %194 : vector<1x1x128xf32> to vector<1x128xf32>
    %c2_105 = arith.constant 2 : index
    %c0_106 = arith.constant 0 : index
    %c0_107 = arith.constant 0 : index
    %196 = vector.load %arg10[%c2_105, %c0_106, %c0_107] : memref<4x1x128xf32, #tpu.memory_space<vmem>>, vector<1x1x128xf32>
    %197 = vector.shape_cast %196 : vector<1x1x128xf32> to vector<1x128xf32>
    %cst_108 = arith.constant dense<0.000000e+00> : vector<128xf32>
    %198 = vector.multi_reduction <add>, %193, %cst_108 [0] : vector<32x128xf32> to vector<128xf32>
    %199 = vector.shape_cast %198 : vector<128xf32> to vector<1x128xf32>
    %200 = arith.mulf %193, %193 : vector<32x128xf32>
    %cst_109 = arith.constant dense<0.000000e+00> : vector<128xf32>
    %201 = vector.multi_reduction <add>, %200, %cst_109 [0] : vector<32x128xf32> to vector<128xf32>
    %202 = vector.shape_cast %201 : vector<128xf32> to vector<1x128xf32>
    %cst_110 = arith.constant 3.125000e-02 : f32
    %203 = vector.broadcast %cst_110 : f32 to vector<1x128xf32>
    %204 = arith.mulf %199, %203 : vector<1x128xf32>
    %cst_111 = arith.constant 3.125000e-02 : f32
    %205 = vector.broadcast %cst_111 : f32 to vector<1x128xf32>
    %206 = arith.mulf %202, %205 : vector<1x128xf32>
    %207 = arith.mulf %204, %204 : vector<1x128xf32>
    %208 = arith.subf %206, %207 : vector<1x128xf32>
    %209 = vector.broadcast %204 : vector<1x128xf32> to vector<32x128xf32>
    %210 = arith.subf %193, %209 : vector<32x128xf32>
    %211 = vector.broadcast %195 : vector<1x128xf32> to vector<32x128xf32>
    %212 = arith.mulf %211, %210 : vector<32x128xf32>
    %cst_112 = arith.constant 9.99999974E-6 : f32
    %213 = vector.broadcast %cst_112 : f32 to vector<1x128xf32>
    %214 = arith.addf %208, %213 : vector<1x128xf32>
    %215 = math.rsqrt %214 : vector<1x128xf32>
    %216 = vector.broadcast %215 : vector<1x128xf32> to vector<32x128xf32>
    %217 = arith.mulf %212, %216 : vector<32x128xf32>
    %218 = vector.broadcast %197 : vector<1x128xf32> to vector<32x128xf32>
    %219 = arith.addf %217, %218 : vector<32x128xf32>
    %cst_113 = arith.constant 0.000000e+00 : f32
    %220 = vector.broadcast %cst_113 : f32 to vector<32x128xf32>
    %221 = arith.maximumf %219, %220 : vector<32x128xf32>
    %222 = arith.truncf %221 : vector<32x128xf32> to vector<32x128xbf16>
    %c2_114 = arith.constant 2 : index
    %c0_115 = arith.constant 0 : index
    %c0_116 = arith.constant 0 : index
    %223 = vector.load %arg11[%c2_114, %c0_115, %c0_116] : memref<4x128x128xbf16, #tpu.memory_space<vmem>>, vector<1x128x128xbf16>
    %224 = vector.shape_cast %223 : vector<1x128x128xbf16> to vector<128x128xbf16>
    %cst_117 = arith.constant dense<0.000000e+00> : vector<32x128xf32>
    %225 = tpu.matmul %222, %224, %cst_117 {dimension_numbers = #tpu.dot_dimension_numbers<[1], [0], [0], [1], [0, 0, 1, 1], [], []>} : vector<32x128xbf16>, vector<128x128xbf16>, vector<32x128xf32> -> vector<32x128xf32>
    %c2_118 = arith.constant 2 : index
    %c0_119 = arith.constant 0 : index
    %c0_120 = arith.constant 0 : index
    %226 = vector.load %arg12[%c2_118, %c0_119, %c0_120] : memref<4x1x128xf32, #tpu.memory_space<vmem>>, vector<1x1x128xf32>
    %227 = vector.shape_cast %226 : vector<1x1x128xf32> to vector<1x128xf32>
    %228 = vector.broadcast %227 : vector<1x128xf32> to vector<32x128xf32>
    %229 = arith.addf %225, %228 : vector<32x128xf32>
    %230 = vector.broadcast %1 : vector<32x1xf32> to vector<32x128xf32>
    %231 = arith.mulf %229, %230 : vector<32x128xf32>
    %c2_121 = arith.constant 2 : index
    %c0_122 = arith.constant 0 : index
    %c0_123 = arith.constant 0 : index
    %232 = vector.load %arg13[%c2_121, %c0_122, %c0_123] : memref<4x1x128xf32, #tpu.memory_space<vmem>>, vector<1x1x128xf32>
    %233 = vector.shape_cast %232 : vector<1x1x128xf32> to vector<1x128xf32>
    %c2_124 = arith.constant 2 : index
    %c0_125 = arith.constant 0 : index
    %c0_126 = arith.constant 0 : index
    %234 = vector.load %arg14[%c2_124, %c0_125, %c0_126] : memref<4x1x128xf32, #tpu.memory_space<vmem>>, vector<1x1x128xf32>
    %235 = vector.shape_cast %234 : vector<1x1x128xf32> to vector<1x128xf32>
    %cst_127 = arith.constant dense<0.000000e+00> : vector<128xf32>
    %236 = vector.multi_reduction <add>, %231, %cst_127 [0] : vector<32x128xf32> to vector<128xf32>
    %237 = vector.shape_cast %236 : vector<128xf32> to vector<1x128xf32>
    %238 = arith.mulf %231, %231 : vector<32x128xf32>
    %cst_128 = arith.constant dense<0.000000e+00> : vector<128xf32>
    %239 = vector.multi_reduction <add>, %238, %cst_128 [0] : vector<32x128xf32> to vector<128xf32>
    %240 = vector.shape_cast %239 : vector<128xf32> to vector<1x128xf32>
    %cst_129 = arith.constant 3.125000e-02 : f32
    %241 = vector.broadcast %cst_129 : f32 to vector<1x128xf32>
    %242 = arith.mulf %237, %241 : vector<1x128xf32>
    %cst_130 = arith.constant 3.125000e-02 : f32
    %243 = vector.broadcast %cst_130 : f32 to vector<1x128xf32>
    %244 = arith.mulf %240, %243 : vector<1x128xf32>
    %245 = arith.mulf %242, %242 : vector<1x128xf32>
    %246 = arith.subf %244, %245 : vector<1x128xf32>
    %247 = vector.broadcast %242 : vector<1x128xf32> to vector<32x128xf32>
    %248 = arith.subf %231, %247 : vector<32x128xf32>
    %249 = vector.broadcast %233 : vector<1x128xf32> to vector<32x128xf32>
    %250 = arith.mulf %249, %248 : vector<32x128xf32>
    %cst_131 = arith.constant 9.99999974E-6 : f32
    %251 = vector.broadcast %cst_131 : f32 to vector<1x128xf32>
    %252 = arith.addf %246, %251 : vector<1x128xf32>
    %253 = math.rsqrt %252 : vector<1x128xf32>
    %254 = vector.broadcast %253 : vector<1x128xf32> to vector<32x128xf32>
    %255 = arith.mulf %250, %254 : vector<32x128xf32>
    %256 = vector.broadcast %235 : vector<1x128xf32> to vector<32x128xf32>
    %257 = arith.addf %255, %256 : vector<32x128xf32>
    %cst_132 = arith.constant 0.000000e+00 : f32
    %258 = vector.broadcast %cst_132 : f32 to vector<32x128xf32>
    %259 = arith.maximumf %257, %258 : vector<32x128xf32>
    %260 = arith.addf %176, %259 : vector<32x128xf32>
    %cst_133 = arith.constant dense<0.000000e+00> : vector<128xf32>
    %261 = vector.multi_reduction <add>, %260, %cst_133 [0] : vector<32x128xf32> to vector<128xf32>
    %262 = vector.shape_cast %261 : vector<128xf32> to vector<1x128xf32>
    %263 = arith.truncf %260 : vector<32x128xf32> to vector<32x128xbf16>
    %cst_134 = arith.constant dense<0.000000e+00> : vector<32x128xf32>
    %264 = tpu.matmul %0, %263, %cst_134 {dimension_numbers = #tpu.dot_dimension_numbers<[1], [0], [0], [1], [0, 0, 1, 1], [], []>} : vector<32x32xbf16>, vector<32x128xbf16>, vector<32x128xf32> -> vector<32x128xf32>
    %c3 = arith.constant 3 : index
    %265 = memref.load %arg1[%c3] : memref<4xf32, #tpu.memory_space<smem>>
    %cst_135 = arith.constant 1.000000e+00 : f32
    %266 = arith.addf %cst_135, %265 : f32
    %267 = vector.broadcast %266 : f32 to vector<32x128xf32>
    %268 = arith.mulf %267, %260 : vector<32x128xf32>
    %269 = arith.addf %268, %264 : vector<32x128xf32>
    %270 = arith.truncf %269 : vector<32x128xf32> to vector<32x128xbf16>
    %c3_136 = arith.constant 3 : index
    %c0_137 = arith.constant 0 : index
    %c0_138 = arith.constant 0 : index
    %271 = vector.load %arg7[%c3_136, %c0_137, %c0_138] : memref<4x128x128xbf16, #tpu.memory_space<vmem>>, vector<1x128x128xbf16>
    %272 = vector.shape_cast %271 : vector<1x128x128xbf16> to vector<128x128xbf16>
    %cst_139 = arith.constant dense<0.000000e+00> : vector<32x128xf32>
    %273 = tpu.matmul %270, %272, %cst_139 {dimension_numbers = #tpu.dot_dimension_numbers<[1], [0], [0], [1], [0, 0, 1, 1], [], []>} : vector<32x128xbf16>, vector<128x128xbf16>, vector<32x128xf32> -> vector<32x128xf32>
    %c3_140 = arith.constant 3 : index
    %c0_141 = arith.constant 0 : index
    %c0_142 = arith.constant 0 : index
    %274 = vector.load %arg8[%c3_140, %c0_141, %c0_142] : memref<4x1x128xf32, #tpu.memory_space<vmem>>, vector<1x1x128xf32>
    %275 = vector.shape_cast %274 : vector<1x1x128xf32> to vector<1x128xf32>
    %276 = vector.broadcast %275 : vector<1x128xf32> to vector<32x128xf32>
    %277 = arith.addf %273, %276 : vector<32x128xf32>
    %c3_143 = arith.constant 3 : index
    %c0_144 = arith.constant 0 : index
    %c0_145 = arith.constant 0 : index
    %278 = vector.load %arg9[%c3_143, %c0_144, %c0_145] : memref<4x1x128xf32, #tpu.memory_space<vmem>>, vector<1x1x128xf32>
    %279 = vector.shape_cast %278 : vector<1x1x128xf32> to vector<1x128xf32>
    %c3_146 = arith.constant 3 : index
    %c0_147 = arith.constant 0 : index
    %c0_148 = arith.constant 0 : index
    %280 = vector.load %arg10[%c3_146, %c0_147, %c0_148] : memref<4x1x128xf32, #tpu.memory_space<vmem>>, vector<1x1x128xf32>
    %281 = vector.shape_cast %280 : vector<1x1x128xf32> to vector<1x128xf32>
    %cst_149 = arith.constant dense<0.000000e+00> : vector<128xf32>
    %282 = vector.multi_reduction <add>, %277, %cst_149 [0] : vector<32x128xf32> to vector<128xf32>
    %283 = vector.shape_cast %282 : vector<128xf32> to vector<1x128xf32>
    %284 = arith.mulf %277, %277 : vector<32x128xf32>
    %cst_150 = arith.constant dense<0.000000e+00> : vector<128xf32>
    %285 = vector.multi_reduction <add>, %284, %cst_150 [0] : vector<32x128xf32> to vector<128xf32>
    %286 = vector.shape_cast %285 : vector<128xf32> to vector<1x128xf32>
    %cst_151 = arith.constant 3.125000e-02 : f32
    %287 = vector.broadcast %cst_151 : f32 to vector<1x128xf32>
    %288 = arith.mulf %283, %287 : vector<1x128xf32>
    %cst_152 = arith.constant 3.125000e-02 : f32
    %289 = vector.broadcast %cst_152 : f32 to vector<1x128xf32>
    %290 = arith.mulf %286, %289 : vector<1x128xf32>
    %291 = arith.mulf %288, %288 : vector<1x128xf32>
    %292 = arith.subf %290, %291 : vector<1x128xf32>
    %293 = vector.broadcast %288 : vector<1x128xf32> to vector<32x128xf32>
    %294 = arith.subf %277, %293 : vector<32x128xf32>
    %295 = vector.broadcast %279 : vector<1x128xf32> to vector<32x128xf32>
    %296 = arith.mulf %295, %294 : vector<32x128xf32>
    %cst_153 = arith.constant 9.99999974E-6 : f32
    %297 = vector.broadcast %cst_153 : f32 to vector<1x128xf32>
    %298 = arith.addf %292, %297 : vector<1x128xf32>
    %299 = math.rsqrt %298 : vector<1x128xf32>
    %300 = vector.broadcast %299 : vector<1x128xf32> to vector<32x128xf32>
    %301 = arith.mulf %296, %300 : vector<32x128xf32>
    %302 = vector.broadcast %281 : vector<1x128xf32> to vector<32x128xf32>
    %303 = arith.addf %301, %302 : vector<32x128xf32>
    %cst_154 = arith.constant 0.000000e+00 : f32
    %304 = vector.broadcast %cst_154 : f32 to vector<32x128xf32>
    %305 = arith.maximumf %303, %304 : vector<32x128xf32>
    %306 = arith.truncf %305 : vector<32x128xf32> to vector<32x128xbf16>
    %c3_155 = arith.constant 3 : index
    %c0_156 = arith.constant 0 : index
    %c0_157 = arith.constant 0 : index
    %307 = vector.load %arg11[%c3_155, %c0_156, %c0_157] : memref<4x128x128xbf16, #tpu.memory_space<vmem>>, vector<1x128x128xbf16>
    %308 = vector.shape_cast %307 : vector<1x128x128xbf16> to vector<128x128xbf16>
    %cst_158 = arith.constant dense<0.000000e+00> : vector<32x128xf32>
    %309 = tpu.matmul %306, %308, %cst_158 {dimension_numbers = #tpu.dot_dimension_numbers<[1], [0], [0], [1], [0, 0, 1, 1], [], []>} : vector<32x128xbf16>, vector<128x128xbf16>, vector<32x128xf32> -> vector<32x128xf32>
    %c3_159 = arith.constant 3 : index
    %c0_160 = arith.constant 0 : index
    %c0_161 = arith.constant 0 : index
    %310 = vector.load %arg12[%c3_159, %c0_160, %c0_161] : memref<4x1x128xf32, #tpu.memory_space<vmem>>, vector<1x1x128xf32>
    %311 = vector.shape_cast %310 : vector<1x1x128xf32> to vector<1x128xf32>
    %312 = vector.broadcast %311 : vector<1x128xf32> to vector<32x128xf32>
    %313 = arith.addf %309, %312 : vector<32x128xf32>
    %314 = vector.broadcast %1 : vector<32x1xf32> to vector<32x128xf32>
    %315 = arith.mulf %313, %314 : vector<32x128xf32>
    %c3_162 = arith.constant 3 : index
    %c0_163 = arith.constant 0 : index
    %c0_164 = arith.constant 0 : index
    %316 = vector.load %arg13[%c3_162, %c0_163, %c0_164] : memref<4x1x128xf32, #tpu.memory_space<vmem>>, vector<1x1x128xf32>
    %317 = vector.shape_cast %316 : vector<1x1x128xf32> to vector<1x128xf32>
    %c3_165 = arith.constant 3 : index
    %c0_166 = arith.constant 0 : index
    %c0_167 = arith.constant 0 : index
    %318 = vector.load %arg14[%c3_165, %c0_166, %c0_167] : memref<4x1x128xf32, #tpu.memory_space<vmem>>, vector<1x1x128xf32>
    %319 = vector.shape_cast %318 : vector<1x1x128xf32> to vector<1x128xf32>
    %cst_168 = arith.constant dense<0.000000e+00> : vector<128xf32>
    %320 = vector.multi_reduction <add>, %315, %cst_168 [0] : vector<32x128xf32> to vector<128xf32>
    %321 = vector.shape_cast %320 : vector<128xf32> to vector<1x128xf32>
    %322 = arith.mulf %315, %315 : vector<32x128xf32>
    %cst_169 = arith.constant dense<0.000000e+00> : vector<128xf32>
    %323 = vector.multi_reduction <add>, %322, %cst_169 [0] : vector<32x128xf32> to vector<128xf32>
    %324 = vector.shape_cast %323 : vector<128xf32> to vector<1x128xf32>
    %cst_170 = arith.constant 3.125000e-02 : f32
    %325 = vector.broadcast %cst_170 : f32 to vector<1x128xf32>
    %326 = arith.mulf %321, %325 : vector<1x128xf32>
    %cst_171 = arith.constant 3.125000e-02 : f32
    %327 = vector.broadcast %cst_171 : f32 to vector<1x128xf32>
    %328 = arith.mulf %324, %327 : vector<1x128xf32>
    %329 = arith.mulf %326, %326 : vector<1x128xf32>
    %330 = arith.subf %328, %329 : vector<1x128xf32>
    %331 = vector.broadcast %326 : vector<1x128xf32> to vector<32x128xf32>
    %332 = arith.subf %315, %331 : vector<32x128xf32>
    %333 = vector.broadcast %317 : vector<1x128xf32> to vector<32x128xf32>
    %334 = arith.mulf %333, %332 : vector<32x128xf32>
    %cst_172 = arith.constant 9.99999974E-6 : f32
    %335 = vector.broadcast %cst_172 : f32 to vector<1x128xf32>
    %336 = arith.addf %330, %335 : vector<1x128xf32>
    %337 = math.rsqrt %336 : vector<1x128xf32>
    %338 = vector.broadcast %337 : vector<1x128xf32> to vector<32x128xf32>
    %339 = arith.mulf %334, %338 : vector<32x128xf32>
    %340 = vector.broadcast %319 : vector<1x128xf32> to vector<32x128xf32>
    %341 = arith.addf %339, %340 : vector<32x128xf32>
    %cst_173 = arith.constant 0.000000e+00 : f32
    %342 = vector.broadcast %cst_173 : f32 to vector<32x128xf32>
    %343 = arith.maximumf %341, %342 : vector<32x128xf32>
    %344 = arith.addf %260, %343 : vector<32x128xf32>
    %cst_174 = arith.constant dense<0.000000e+00> : vector<128xf32>
    %345 = vector.multi_reduction <add>, %344, %cst_174 [0] : vector<32x128xf32> to vector<128xf32>
    %346 = vector.shape_cast %345 : vector<128xf32> to vector<1x128xf32>
    %347 = tpu.concatenate %10, %94, %178, %262, %346 in 1 : vector<1x128xf32>, vector<1x128xf32>, vector<1x128xf32>, vector<1x128xf32>, vector<1x128xf32> -> vector<1x640xf32>
    %348 = arith.truncf %347 : vector<1x640xf32> to vector<1x640xbf16>
    %c0_175 = arith.constant 0 : index
    %c0_176 = arith.constant 0 : index
    %349 = vector.load %arg15[%c0_175, %c0_176] : memref<640x128xbf16, #tpu.memory_space<vmem>>, vector<640x128xbf16>
    %cst_177 = arith.constant dense<0.000000e+00> : vector<1x128xf32>
    %350 = tpu.matmul %348, %349, %cst_177 {dimension_numbers = #tpu.dot_dimension_numbers<[1], [0], [0], [1], [0, 0, 1, 1], [], []>} : vector<1x640xbf16>, vector<640x128xbf16>, vector<1x128xf32> -> vector<1x128xf32>
    %c0_178 = arith.constant 0 : index
    %c0_179 = arith.constant 0 : index
    %351 = vector.load %arg16[%c0_178, %c0_179] : memref<1x128xf32, #tpu.memory_space<vmem>>, vector<1x128xf32>
    %352 = arith.addf %350, %351 : vector<1x128xf32>
    %c0_180 = arith.constant 0 : index
    %c0_181 = arith.constant 0 : index
    %353 = vector.load %arg22[%c0_180, %c0_181] : memref<1x128xf32, #tpu.memory_space<vmem>>, vector<1x128xf32>
    tpu.vector_store %arg22[%c0_180, %c0_181], %352 {strides = array<i32>} : memref<1x128xf32, #tpu.memory_space<vmem>>, vector<1x128xf32>,
    %354 = arith.addf %10, %94 : vector<1x128xf32>
    %355 = arith.addf %354, %178 : vector<1x128xf32>
    %356 = arith.addf %355, %262 : vector<1x128xf32>
    %357 = arith.addf %356, %346 : vector<1x128xf32>
    %358 = arith.truncf %357 : vector<1x128xf32> to vector<1x128xbf16>
    %c0_182 = arith.constant 0 : index
    %c0_183 = arith.constant 0 : index
    %359 = vector.load %arg17[%c0_182, %c0_183] : memref<128x128xbf16, #tpu.memory_space<vmem>>, vector<128x128xbf16>
    %cst_184 = arith.constant dense<0.000000e+00> : vector<1x128xf32>
    %360 = tpu.matmul %358, %359, %cst_184 {dimension_numbers = #tpu.dot_dimension_numbers<[1], [0], [0], [1], [0, 0, 1, 1], [], []>} : vector<1x128xbf16>, vector<128x128xbf16>, vector<1x128xf32> -> vector<1x128xf32>
    %c0_185 = arith.constant 0 : index
    %c0_186 = arith.constant 0 : index
    %361 = vector.load %arg18[%c0_185, %c0_186] : memref<1x128xf32, #tpu.memory_space<vmem>>, vector<1x128xf32>
    %362 = arith.addf %360, %361 : vector<1x128xf32>
    %cst_187 = arith.constant 0.000000e+00 : f32
    %363 = vector.broadcast %cst_187 : f32 to vector<1x128xf32>
    %364 = arith.maximumf %362, %363 : vector<1x128xf32>
    %365 = arith.truncf %364 : vector<1x128xf32> to vector<1x128xbf16>
    %c0_188 = arith.constant 0 : index
    %c0_189 = arith.constant 0 : index
    %366 = vector.load %arg19[%c0_188, %c0_189] : memref<128x128xbf16, #tpu.memory_space<vmem>>, vector<128x128xbf16>
    %cst_190 = arith.constant dense<0.000000e+00> : vector<1x128xf32>
    %367 = tpu.matmul %365, %366, %cst_190 {dimension_numbers = #tpu.dot_dimension_numbers<[1], [0], [0], [1], [0, 0, 1, 1], [], []>} : vector<1x128xbf16>, vector<128x128xbf16>, vector<1x128xf32> -> vector<1x128xf32>
    %c0_191 = arith.constant 0 : index
    %c0_192 = arith.constant 0 : index
    %368 = vector.load %arg20[%c0_191, %c0_192] : memref<1x128xf32, #tpu.memory_space<vmem>>, vector<1x128xf32>
    %369 = arith.addf %367, %368 : vector<1x128xf32>
    %c0_193 = arith.constant 0 : index
    %c0_194 = arith.constant 0 : index
    %370 = vector.load %arg21[%c0_193, %c0_194] : memref<1x128xf32, #tpu.memory_space<vmem>>, vector<1x128xf32>
    tpu.vector_store %arg21[%c0_193, %c0_194], %369 {strides = array<i32>} : memref<1x128xf32, #tpu.memory_space<vmem>>, vector<1x128xf32>,
    return
  }
  func.func @transform_0(%arg0: i32) -> i32 {
    %c0_i32 = arith.constant 0 : i32
    %c0_i32_0 = arith.constant 0 : i32
    return %c0_i32 : i32
  }
  func.func @transform_1(%arg0: i32) -> (i32, i32) {
    %c0_i32 = arith.constant 0 : i32
    %c0_i32_0 = arith.constant 0 : i32
    %c0_i32_1 = arith.constant 0 : i32
    return %c0_i32, %c0_i32_0 : i32, i32
  }
  func.func @transform_2(%arg0: i32) -> (i32, i32) {
    %c0_i32 = arith.constant 0 : i32
    %c0_i32_0 = arith.constant 0 : i32
    %c0_i32_1 = arith.constant 0 : i32
    return %c0_i32, %c0_i32_0 : i32, i32
  }
  func.func @transform_3(%arg0: i32) -> (i32, i32) {
    %c0_i32 = arith.constant 0 : i32
    %c0_i32_0 = arith.constant 0 : i32
    %c0_i32_1 = arith.constant 0 : i32
    return %c0_i32, %c0_i32_0 : i32, i32
  }
  func.func @transform_4(%arg0: i32) -> (i32, i32) {
    %c0_i32 = arith.constant 0 : i32
    %c0_i32_0 = arith.constant 0 : i32
    %c0_i32_1 = arith.constant 0 : i32
    return %c0_i32, %c0_i32_0 : i32, i32
  }
  func.func @transform_5(%arg0: i32) -> (i32, i32) {
    %c0_i32 = arith.constant 0 : i32
    %c0_i32_0 = arith.constant 0 : i32
    %c0_i32_1 = arith.constant 0 : i32
    return %c0_i32, %c0_i32_0 : i32, i32
  }
  func.func @transform_6(%arg0: i32) -> (i32, i32, i32) {
    %c0_i32 = arith.constant 0 : i32
    %c0_i32_0 = arith.constant 0 : i32
    %c0_i32_1 = arith.constant 0 : i32
    %c0_i32_2 = arith.constant 0 : i32
    return %c0_i32, %c0_i32_0, %c0_i32_1 : i32, i32, i32
  }
  func.func @transform_7(%arg0: i32) -> (i32, i32, i32) {
    %c0_i32 = arith.constant 0 : i32
    %c0_i32_0 = arith.constant 0 : i32
    %c0_i32_1 = arith.constant 0 : i32
    %c0_i32_2 = arith.constant 0 : i32
    return %c0_i32, %c0_i32_0, %c0_i32_1 : i32, i32, i32
  }
  func.func @transform_8(%arg0: i32) -> (i32, i32, i32) {
    %c0_i32 = arith.constant 0 : i32
    %c0_i32_0 = arith.constant 0 : i32
    %c0_i32_1 = arith.constant 0 : i32
    %c0_i32_2 = arith.constant 0 : i32
    return %c0_i32, %c0_i32_0, %c0_i32_1 : i32, i32, i32
  }
  func.func @transform_9(%arg0: i32) -> (i32, i32, i32) {
    %c0_i32 = arith.constant 0 : i32
    %c0_i32_0 = arith.constant 0 : i32
    %c0_i32_1 = arith.constant 0 : i32
    %c0_i32_2 = arith.constant 0 : i32
    return %c0_i32, %c0_i32_0, %c0_i32_1 : i32, i32, i32
  }
  func.func @transform_10(%arg0: i32) -> (i32, i32, i32) {
    %c0_i32 = arith.constant 0 : i32
    %c0_i32_0 = arith.constant 0 : i32
    %c0_i32_1 = arith.constant 0 : i32
    %c0_i32_2 = arith.constant 0 : i32
    return %c0_i32, %c0_i32_0, %c0_i32_1 : i32, i32, i32
  }
  func.func @transform_11(%arg0: i32) -> (i32, i32, i32) {
    %c0_i32 = arith.constant 0 : i32
    %c0_i32_0 = arith.constant 0 : i32
    %c0_i32_1 = arith.constant 0 : i32
    %c0_i32_2 = arith.constant 0 : i32
    return %c0_i32, %c0_i32_0, %c0_i32_1 : i32, i32, i32
  }
  func.func @transform_12(%arg0: i32) -> (i32, i32, i32) {
    %c0_i32 = arith.constant 0 : i32
    %c0_i32_0 = arith.constant 0 : i32
    %c0_i32_1 = arith.constant 0 : i32
    %c0_i32_2 = arith.constant 0 : i32
    return %c0_i32, %c0_i32_0, %c0_i32_1 : i32, i32, i32
  }
  func.func @transform_13(%arg0: i32) -> (i32, i32, i32) {
    %c0_i32 = arith.constant 0 : i32
    %c0_i32_0 = arith.constant 0 : i32
    %c0_i32_1 = arith.constant 0 : i32
    %c0_i32_2 = arith.constant 0 : i32
    return %c0_i32, %c0_i32_0, %c0_i32_1 : i32, i32, i32
  }
  func.func @transform_14(%arg0: i32) -> (i32, i32) {
    %c0_i32 = arith.constant 0 : i32
    %c0_i32_0 = arith.constant 0 : i32
    %c0_i32_1 = arith.constant 0 : i32
    return %c0_i32, %c0_i32_0 : i32, i32
  }
  func.func @transform_15(%arg0: i32) -> (i32, i32) {
    %c0_i32 = arith.constant 0 : i32
    %c0_i32_0 = arith.constant 0 : i32
    %c0_i32_1 = arith.constant 0 : i32
    return %c0_i32, %c0_i32_0 : i32, i32
  }
  func.func @transform_16(%arg0: i32) -> (i32, i32) {
    %c0_i32 = arith.constant 0 : i32
    %c0_i32_0 = arith.constant 0 : i32
    %c0_i32_1 = arith.constant 0 : i32
    return %c0_i32, %c0_i32_0 : i32, i32
  }
  func.func @transform_17(%arg0: i32) -> (i32, i32) {
    %c0_i32 = arith.constant 0 : i32
    %c0_i32_0 = arith.constant 0 : i32
    %c0_i32_1 = arith.constant 0 : i32
    return %c0_i32, %c0_i32_0 : i32, i32
  }
  func.func @transform_18(%arg0: i32) -> (i32, i32) {
    %c0_i32 = arith.constant 0 : i32
    %c0_i32_0 = arith.constant 0 : i32
    %c0_i32_1 = arith.constant 0 : i32
    return %c0_i32, %c0_i32_0 : i32, i32
  }
  func.func @transform_19(%arg0: i32) -> (i32, i32) {
    %c0_i32 = arith.constant 0 : i32
    %c0_i32_0 = arith.constant 0 : i32
    %c0_i32_1 = arith.constant 0 : i32
    return %c0_i32, %c0_i32_0 : i32, i32
  }
  func.func @transform_20(%arg0: i32) -> (i32, i32) {
    %c0_i32 = arith.constant 0 : i32
    %c0_i32_0 = arith.constant 0 : i32
    %c0_i32_1 = arith.constant 0 : i32
    return %c0_i32, %c0_i32_0 : i32, i32
  }
  func.func @transform_21(%arg0: i32) -> (i32, i32) {
    %c0_i32 = arith.constant 0 : i32
    %c0_i32_0 = arith.constant 0 : i32
    %c0_i32_1 = arith.constant 0 : i32
    return %c0_i32, %c0_i32_0 : i32, i32
  }
}

</mosaic_0001>

<bundles_post_ra>
// kernel: _gin_forward_impl.1
= control target key start
LH: loop header
LB: loop body
LE: loop exit
PB: predicated region body
PF: predicated region fallthrough
CT: control target
= control target key end

     0   :  { %s3817_s0 = inlined_call_operand.vmem [shape: f32[4], index: 0, kind: input, shape index: {}]   ;;  %s3818_s1 = inlined_call_operand.vmem [shape: bf16[32,32], index: 1, kind: input, shape index: {}]   ;;  %s3819_s2 = inlined_call_operand.vmem [shape: f32[32,128], index: 2, kind: input, shape index: {}]   ;;  %s3820_s3 = inlined_call_operand.vmem [shape: f32[32,1], index: 3, kind: input, shape index: {}]   ;;  %s3821_s4 = inlined_call_operand.vmem [shape: bf16[128,128], index: 4, kind: input, shape index: {}]   ;;  %s3822_s5 = inlined_call_operand.vmem [shape: f32[1,128], index: 5, kind: input, shape index: {}]   ;;  %s3823_s6 = inlined_call_operand.hbm [shape: bf16[4,128,128], index: 6, kind: input, shape index: {}]   ;;  %s3824_s7 = inlined_call_operand.vmem [shape: f32[4,1,128], index: 7, kind: input, shape index: {}]   ;;  %s3825_s8 = inlined_call_operand.vmem [shape: f32[4,1,128], index: 8, kind: input, shape index: {}]   ;;  %s3826_s9 = inlined_call_operand.vmem [shape: f32[4,1,128], index: 9, kind: input, shape index: {}]   ;;  %s3827_s10 = inlined_call_operand.hbm [shape: bf16[4,128,128], index: 10, kind: input, shape index: {}]   ;;  %s3828_s11 = inlined_call_operand.vmem [shape: f32[4,1,128], index: 11, kind: input, shape index: {}]   ;;  %s3829_s12 = inlined_call_operand.vmem [shape: f32[4,1,128], index: 12, kind: input, shape index: {}]   ;;  %s3830_s13 = inlined_call_operand.vmem [shape: f32[4,1,128], index: 13, kind: input, shape index: {}]   ;;  %s3831_s14 = inlined_call_operand.hbm [shape: bf16[640,128], index: 14, kind: input, shape index: {}]   ;;  %s3832_s15 = inlined_call_operand.vmem [shape: f32[1,128], index: 15, kind: input, shape index: {}]   ;;  %s3833_s16 = inlined_call_operand.vmem [shape: bf16[128,128], index: 16, kind: input, shape index: {}]   ;;  %s3834_s17 = inlined_call_operand.vmem [shape: f32[1,128], index: 17, kind: input, shape index: {}]   ;;  %s3835_s18 = inlined_call_operand.hbm [shape: bf16[128,128], index: 18, kind: input, shape index: {}]   ;;  %s3836_s19 = inlined_call_operand.vmem [shape: f32[1,128], index: 19, kind: input, shape index: {}]   ;;  %s3837_s20 = inlined_call_operand.hbm [shape: f32[1,128], index: 20, kind: output, shape index: {0}]   ;;  %s3838_s21 = inlined_call_operand.hbm [shape: f32[1,128], index: 21, kind: output, shape index: {1}]  }
   0x1   :  { %3843 = sst [smem:[#allocation21_spill]] %s3817_s0 }
   0x2   :  { %3844 = sst [smem:[#allocation22_spill]] %s3818_s1 }
   0x3   :  { %3845 = sst [smem:[#allocation23_spill]] %s3819_s2 }
   0x4   :  { %3846 = sst [smem:[#allocation24_spill]] %s3820_s3 }
   0x5   :  { %3847 = sst [smem:[#allocation25_spill]] %s3821_s4 }
   0x6   :  { %3848 = sst [smem:[#allocation26_spill]] %s3822_s5 }
   0x7   :  { %3849 = sst [smem:[#allocation27_spill]] %s3837_s20 }
   0x8   :  { %27 = vsyncpa [#allocation5], 0 }
   0x9   :  { %28 = vsyncpa [#allocation3], 0 }
   0xa   :  { %29 = vsyncpa [#allocation8], 0 }
   0xb   :  { %30 = vsyncpa [#allocation11], 0 }
   0xc   :  { %31 = vsyncpa [#allocation4], 0 }
   0xd   :  { %32 = vsyncpa [#allocation14], 0  ;;  %s75_s26 = sshll.u32 %s3827_s10, 4  ;;  %s3239_s27 = smov [#allocation7]   ;;  %s76_s26 = int_to_ptr.hbm [resolvable:$true] %s75_s26 }
   0xe   :  { %s77_s3 = sshll.u32 %s3239_s27, 4  ;;  %s3850_s0 = sld [smem:[#allocation21_spill]]  ;;  %s78_s3 = int_to_ptr.vmem [resolvable:$true] %s77_s3 }
   0xf   :  { %s3240_s30 = smov 64   ;;  %s3241_s5 = smov 4  }
  0x10   :  { %83 = dma.hbm_to_vmem [thread:$0]  %s76_s26, 4096, %s78_s3, [#allocation8], %s3240_s30, %s3240_s30, %s3241_s5  }
  0x11   :  { %s3242_s22 = smov [#allocation2]   ;;  %s56_s24 = sshll.u32 %s3823_s6, 4  ;;  %s57_s24 = int_to_ptr.hbm [resolvable:$true] %s56_s24 }
  0x12   :  { %s3243_s10 = smov [#allocation6]   ;;  %s94_s20 = sshll.u32 %s3831_s14, 4  ;;  %s95_s20 = int_to_ptr.hbm [resolvable:$true] %s94_s20 }
  0x13   :  { %s58_s2 = sshll.u32 %s3243_s10, 4  ;;  %s3244_s28 = smov [#allocation9]   ;;  %s59_s2 = int_to_ptr.vmem [resolvable:$true] %s58_s2 }
  0x14   :  { %s38_s4 = sshll.u32 %s3850_s0, 4  ;;  %s96_s29 = sshll.u32 %s3244_s28, 4  ;;  %s39_s4 = int_to_ptr.vmem [resolvable:$true] %s38_s4  ;;  %s97_s29 = int_to_ptr.vmem [resolvable:$true] %s96_s29 }
  0x15   :  { %41 = dma.vmem_to_smem %s39_s4, 16, %s3242_s22, [#allocation5]  }
  0x16   :  { %64 = dma.hbm_to_vmem [thread:$0]  %s57_s24, 4096, %s59_s2, [#allocation3], %s3240_s30, %s3240_s30, %s3241_s5  }
  0x17   :  { %s113_s0 = sshll.u32 %s3835_s18, 4  ;;  %s3245_s6 = smov [#allocation10]   ;;  %s114_s0 = int_to_ptr.hbm [resolvable:$true] %s113_s0 }
  0x18   :  { %102 = dma.hbm_to_vmem [thread:$0]  %s95_s20, 5120, %s97_s29, [#allocation8], %s3240_s30, %s3240_s30, %s3241_s5  }
  0x19   :  { %s115_s4 = sshll.u32 %s3245_s6, 4  ;;  %s116_s4 = int_to_ptr.vmem [resolvable:$true] %s115_s4 }
  0x1a   :  { %121 = dma.hbm_to_vmem [thread:$0]  %s114_s0, 1024, %s116_s4, [#allocation11], %s3240_s30, %s3240_s30, %s3241_s5  }
  0x1b   :  { %3227 = dma.done.wait [#allocation5], 16  }
  0x1c   :  { %3228 = vsyncadd [#allocation5], 4294967280 }
  0x1d   :  { %3229 = dma.done.wait [#allocation3], 4096  }
  0x1e   :  { %3230 = vsyncadd [#allocation3], 4294963200 }
  0x1f   :  { %3231 = dma.done.wait [#allocation8], 9216  }
  0x20   :  { %3232 = vsyncadd [#allocation8], 4294958080 }
  0x21   :  { %3233 = dma.done.wait [#allocation11], 1024  }
  0x22   :  { %3234 = vsyncadd [#allocation11], 4294966272 }
  0x23   :  { %144 = sfence }
  0x24   :  { %s3851_s23 = sld [smem:[#allocation25_spill]]  ;;  %v2903_v17 = vld [vmem:[#allocation6 + $0x38] sm:$0xff]  ;;  %v2902_v18 = vld [vmem:[#allocation6 + $0x30] sm:$0xff]  ;;  %v2901_v23 = vld [vmem:[#allocation6 + $0x28] sm:$0xff]  ;;  %vm268_vm0 = vcmask 261120  }
  0x25   :  { %s3852_s4 = sld [smem:[#allocation23_spill]]  ;;  %375 = vmatpush.bf16.msra.mxu2 %v2903_v17  ;;  %v2900_v27 = vld [vmem:[#allocation6 + $0x20] sm:$0xff]  ;;  %v2899_v30 = vld [vmem:[#allocation6 + $0x18] sm:$0xff]  ;;  %v2898_v32 = vld [vmem:[#allocation6 + $0x10] sm:$0xff] }
  0x26   :  { %s3853_s24 = sld [smem:[#allocation26_spill]]  ;;  %v2897_v33 = vld [vmem:[#allocation6 + $0x8] sm:$0xff]  ;;  %v2896_v34 = vld [vmem:[#allocation6] sm:$0xff]  ;;  %v2911_v52 = vld [vmem:[#allocation7 + $0x38] sm:$0xff] }
  0x27   :  { %s3854_s25 = sld [smem:[#allocation22_spill]]  ;;  %529 = vmatpush.bf16.msra.mxu3 %v2911_v52  ;;  %v2910_v53 = vld [vmem:[#allocation7 + $0x30] sm:$0xff]  ;;  %v3029_v54 = vld [vmem:[%s3824_s7] ss:$0 sm:$0xff]  ;;  %v2909_v57 = vld [vmem:[#allocation7 + $0x28] sm:$0xff] }
  0x28   :  { %s294_s29 = sld [smem:[#allocation2]]  ;;  %v2908_v60 = vld [vmem:[#allocation7 + $0x20] sm:$0xff] }
  0x29   :  { %376 = vmatpush.bf16.msra.mxu2 %v2902_v18  ;;  %s3855_s14 = sld [smem:[#allocation24_spill]] }
  0x2a   :  { %v2895_v0 = vld [vmem:[%s3851_s23 + $0x38] sm:$0xff]  ;;  %v2894_v1 = vld [vmem:[%s3851_s23 + $0x30] sm:$0xff]  ;;  %v2893_v2 = vld [vmem:[%s3851_s23 + $0x28] sm:$0xff]  ;;  %s2445_s6 = sld [smem:[#allocation2 + $0x1]] }
  0x2b   :  { %228 = vmatpush.bf16.msra.mxu0 %v2895_v0  ;;  %v2892_v3 = vld [vmem:[%s3851_s23 + $0x20] sm:$0xff]  ;;  %v2891_v4 = vld [vmem:[%s3851_s23 + $0x18] sm:$0xff]  ;;  %v2890_v5 = vld [vmem:[%s3851_s23 + $0x10] sm:$0xff]  ;;  %530 = vmatpush.bf16.msra.mxu3 %v2910_v53  ;;  %s2518_s28 = sld [smem:[#allocation2 + $0x2]] }
  0x2c   :  { %v2889_v6 = vld [vmem:[%s3851_s23 + $0x8] sm:$0xff]  ;;  %v2888_v7 = vld [vmem:[%s3851_s23] sm:$0xff]  ;;  %v156_v11 = vld [vmem:[%s3852_s4 + $0x10] sm:$0xff]  ;;  %s3856_s18 = sld [smem:[#allocation27_spill]] }
  0x2d   :  { %v154_v8 = vld [vmem:[%s3852_s4] sm:$0xff]  ;;  %v155_v9 = vld [vmem:[%s3852_s4 + $0x8] sm:$0xff]  ;;  %v157_v12 = vld [vmem:[%s3852_s4 + $0x18] sm:$0xff]  ;;  %377 = vmatpush.bf16.msra.mxu2 %v2901_v23 }
  0x2e   :  { %v158_v10 = vpack.c.bf16 %v155_v9, %v154_v8  ;;  %v159_v13 = vpack.c.bf16 %v157_v12, %v156_v11  ;;  %v3028_v19 = vld [vmem:[%s3853_s24] ss:$0 sm:$0xff]  ;;  %v3435_v31 = vld [vmem:[%s3854_s25 + $0x8] sm:$0xff]  ;;  %s295_s26 = sadd.f32 1.0, %s294_s29  ;;  %v2906_v9 = vld [vmem:[#allocation7 + $0x10] sm:$0xff] }
  0x2f   :  { %229 = vmatpush.bf16.msra.mxu0 %v2894_v1  ;;  %v3428_v29 = vld [vmem:[%s3854_s25] sm:$0xff]  ;;  %531 = vmatpush.bf16.msra.mxu3 %v2909_v57  ;;  %v151_v52 = vld [vmem:[%s3855_s14 + $0x8] sm:$0xff] }
  0x30   :  { %v296_v36 = vstv %s295_s26  ;;  %s672_s4 = sadd.f32 1.0, %s2445_s6 }
  0x31   :  { %378 = vmatpush.bf16.msra.mxu2 %v2900_v27  ;;  %s1037_s29 = sadd.f32 1.0, %s2518_s28 }
  0x32   :  { %s2308_s20 = sshll.u32 %s3856_s18, 4  ;;  %s2309_s20 = int_to_ptr.hbm [resolvable:$true] %s2308_s20 }
  0x33   :  { %230 = vmatpush.bf16.msra.mxu0 %v2893_v2  ;;  %532 = vmatpush.bf16.msra.mxu3 %v2908_v60  ;;  %v2907_v2 = vld [vmem:[#allocation7 + $0x18] sm:$0xff] }
  0x35   :  { %379 = vmatpush.bf16.msra.mxu2 %v2899_v30 }
  0x37   :  { %231 = vmatpush.bf16.msra.mxu0 %v2892_v3  ;;  %533 = vmatpush.bf16.msra.mxu3 %v2907_v2 }
  0x39   :  { %380 = vmatpush.bf16.msra.mxu2 %v2898_v32 }
  0x3b   :  { %232 = vmatpush.bf16.msra.mxu0 %v2891_v4  ;;  %534 = vmatpush.bf16.msra.mxu3 %v2906_v9 }
  0x3d   :  { %381 = vmatpush.bf16.msra.mxu2 %v2897_v33 }
  0x3f   :  { %233 = vmatpush.bf16.msra.mxu0 %v2890_v5 }
  0x41   :  { %382 = vmatpush.bf16.msra.mxu2 %v2896_v34 }
  0x43   :  { %234 = vmatpush.bf16.msra.mxu0 %v2889_v6 }
  0x47   :  { %235 = vmatpush.bf16.msra.mxu0 %v2888_v7 }
  0x4a   :  { %236 = vmatmul.bf16.vlgmr.msra.gmra.mxu0 %v158_v10 }
  0x5a   :  { %241 = vmatmul.bf16.gmra.mxu0 %v159_v13 }
  0xc7   :  { %v237_v14 = vpop.f32.mrf.mxu0 }
  0xc8   :  { %v3421_v26 = vadd.f32 %v3028_v19, %v237_v14  ;;  %v2905_v14 = vld [vmem:[#allocation7 + $0x8] sm:$0xff] }
  0xc9   :  { %535 = vmatpush.bf16.msra.mxu3 %v2905_v14 }
  0xca   :  { %v297_v37 = vmul.f32 %v296_v36, %v3421_v26 }
  0xcf   :  { %v239_v15 = vpop.f32.mrf.mxu0 }
  0xd0   :  { %v3417_v24 = vadd.f32 %v3028_v19, %v239_v15 }
  0xd2   :  { %v256_v28 = vpack.c.bf16 %v3417_v24, %v3421_v26  ;;  %v298_v38 = vmul.f32 %v296_v36, %v3417_v24 }
  0xd7   :  { %v242_v16 = vpop.f32.mrf.mxu0 }
  0xd8   :  { %v3413_v21 = vadd.f32 %v3028_v19, %v242_v16 }
  0xda   :  { %v299_v44 = vmul.f32 %v296_v36, %v3413_v21 }
  0xdf   :  { %v244_v20 = vpop.f32.mrf.mxu0 }
  0xe0   :  { %v3415_v22 = vadd.f32 %v3028_v19, %v244_v20  ;;  %v2904_v19 = vld [vmem:[#allocation7] sm:$0xff] }
  0xe1   :  { %536 = vmatpush.bf16.msra.mxu3 %v2904_v19 }
  0xe2   :  { %v257_v25 = vpack.c.bf16 %v3415_v22, %v3413_v21  ;;  %v300_v45 = vmul.f32 %v296_v36, %v3415_v22 }
  0xe4   :  { %281 = vmatpush.bf16.msra.mxu1 %v257_v25 }
  0xe8   :  { %282 = vmatpush.bf16.msra.mxu1 %v256_v28 }
  0xeb   :  { %2377 = vmatmul.msk.bf16.vlgmr.msra.gmra.mxu1 %vm268_vm0, %v3428_v29 }
  0xfb   :  { %2378 = vmatmul.msk.bf16.gmra.mxu1 %vm268_vm0, %v3435_v31 }
 0x168   :  { %v284_v35 = vpop.f32.mrf.mxu1 }
 0x169   :  { %v301_v40 = vadd.f32 %v297_v37, %v284_v35 }
 0x170   :  { %v286_v39 = vpop.f32.mrf.mxu1 }
 0x171   :  { %v302_v41 = vadd.f32 %v298_v38, %v286_v39  ;;  %v150_v39 = vld [vmem:[%s3855_s14] sm:$0xff] }
 0x173   :  { %v305_v42 = vpack.c.bf16 %v302_v41, %v301_v40  ;;  %v152_v40 = vld [vmem:[%s3855_s14 + $0x10] sm:$0xff] }
 0x175   :  { %383 = vmatmul.bf16.vlgmr.msra.gmra.mxu2 %v305_v42  ;;  %v3246_v42 = vmov 0  }
 0x176   :  { %3026 = vset.pattern.permute.xlu0 %v3246_v42  ;;  %3027 = vset.pattern.permute.xlu1 %v3246_v42 }
 0x177   :  { %550 = vperm.xlu0 %3026, %v150_v39   ;;  %560 = vperm.xlu1 %3027, %v152_v40  }
 0x178   :  { %v289_v43 = vpop.f32.mrf.mxu1 }
 0x179   :  { %v303_v47 = vadd.f32 %v299_v44, %v289_v43  ;;  %v3030_v43 = vld [vmem:[%s3825_s8] ss:$0 sm:$0xff] }
 0x17f   :  { %555 = vperm.xlu0 %3026, %v151_v52  }
 0x180   :  { %v291_v46 = vpop.f32.mrf.mxu1 }
 0x181   :  { %v304_v48 = vadd.f32 %v300_v45, %v291_v46 }
 0x183   :  { %v306_v49 = vpack.c.bf16 %v304_v48, %v303_v47 }
 0x185   :  { %388 = vmatmul.bf16.gmra.mxu2 %v306_v49 }
 0x1f8   :  { %v384_v50 = vpop.f32.mrf.mxu2 }
 0x1f9   :  { %v385_v58 = vadd.f32 %v3029_v54, %v384_v50  ;;  %v3031_v50 = vld [vmem:[%s3826_s9] ss:$0 sm:$0xff] }
 0x1fb   :  { %v405_v62 = vmul.f32 %v385_v58, %v385_v58 }
 0x200   :  { %v386_v51 = vpop.f32.mrf.mxu2 }
 0x201   :  { %v3446_v56 = vadd.f32 %v3029_v54, %v386_v51 }
 0x203   :  { %v406_v61 = vmul.f32 %v3446_v56, %v3446_v56  ;;  %v396_v63 = vadd.f32 %v3446_v56, %v385_v58 }
 0x205   :  { %v409_v3 = vadd.f32 %v406_v61, %v405_v62 }
 0x208   :  { %v389_v55 = vpop.f32.mrf.mxu2 }
 0x209   :  { %v3448_v59 = vadd.f32 %v3029_v54, %v389_v55  ;;  %v153_v55 = vld [vmem:[%s3855_s14 + $0x18] sm:$0xff] }
 0x20a   :  { %565 = vperm.xlu1 %3027, %v153_v55  }
 0x20b   :  { %v407_v0 = vmul.f32 %v3448_v59, %v3448_v59  ;;  %v397_v4 = vadd.f32 %v396_v63, %v3448_v59 }
 0x20d   :  { %v410_v6 = vadd.f32 %v409_v3, %v407_v0 }
 0x210   :  { %v391_v1 = vpop.f32.mrf.mxu2 }
 0x211   :  { %v3456_v5 = vadd.f32 %v3029_v54, %v391_v1 }
 0x213   :  { %v398_v7 = vadd.f32 %v397_v4, %v3456_v5  ;;  %v408_v8 = vmul.f32 %v3456_v5, %v3456_v5 }
 0x215   :  { %v399_v10 = vrot.slane %v398_v7, 4  ;;  %v411_v11 = vadd.f32 %v410_v6, %v408_v8 }
 0x217   :  { %v400_v12 = vadd.f32 %v399_v10, %v398_v7  ;;  %v412_v13 = vrot.slane %v411_v11, 4 }
 0x219   :  { %v401_v15 = vrot.slane %v400_v12, 2  ;;  %v413_v16 = vadd.f32 %v412_v13, %v411_v11  ;;  %v3482_v11 = vpop.permute.xlu0 %550  ;;  %v3487_v13 = vpop.permute.xlu1 %560 }
 0x21b   :  { %v402_v17 = vadd.f32 %v401_v15, %v400_v12  ;;  %v414_v18 = vrot.slane %v413_v16, 2 }
 0x21d   :  { %v403_v20 = vrot.slane %v402_v17, 1  ;;  %v415_v23 = vadd.f32 %v414_v18, %v413_v16 }
 0x21f   :  { %v404_v25 = vadd.f32 %v403_v20, %v402_v17  ;;  %v416_v27 = vrot.slane %v415_v23, 1 }
 0x221   :  { %v417_v28 = vadd.f32 %v416_v27, %v415_v23  ;;  %v418_v30 = vmul.f32 0.03125, %v404_v25  ;;  %v3489_v14 = vpop.permute.xlu0 %555 }
 0x223   :  { %v419_v32 = vmul.f32 0.03125, %v417_v28  ;;  %v420_v33 = vmul.f32 %v418_v30, %v418_v30  ;;  %v422_v44 = vsub.f32 %v385_v58, %v418_v30  ;;  %v423_v45 = vsub.f32 %v3446_v56, %v418_v30 }
 0x224   :  { %v425_v58 = vsub.f32 %v3456_v5, %v418_v30  ;;  %v424_v62 = vsub.f32 %v3448_v59, %v418_v30  ;;  %v3032_v59 = vld [vmem:[%s3828_s11] ss:$0 sm:$0xff] }
 0x225   :  { %v421_v34 = vsub.f32 %v419_v32, %v420_v33  ;;  %v429_v48 = vmul.f32 %v3030_v43, %v422_v44  ;;  %v430_v49 = vmul.f32 %v3030_v43, %v423_v45 }
 0x226   :  { %v432_v0 = vmul.f32 %v3030_v43, %v425_v58  ;;  %v431_v1 = vmul.f32 %v3030_v43, %v424_v62 }
 0x227   :  { %v433_v35 = vadd.f32 1e-05, %v421_v34 }
 0x229   :  { %3053 = vrsqrt.f32 %v433_v35  ;;  %vm440_vm2 = vweird.f32 %v433_v35 }
 0x22f   :  { %v3054_v36 = vpop.eup %3053 }
 0x230   :  { %v435_v37 = vmul.f32 %v3054_v36, %v433_v35  ;;  %vm441_vm1 = vweird.f32 %v3054_v36 }
 0x231   :  { %vm442_vm3 = vmor %vm440_vm2, %vm441_vm1 }
 0x232   :  { %v436_v38 = vmul.f32 %v3054_v36, %v435_v37 }
 0x234   :  { %v437_v41 = vmul.f32 0.5, %v436_v38 }
 0x236   :  { %v438_v46 = vsub.f32 1.5, %v437_v41 }
 0x238   :  { %v439_v47 = vmul.f32 %v3054_v36, %v438_v46 }
 0x23a   :  { %v443_v51 = vsel %vm442_vm3, %v3054_v36, %v439_v47 }
 0x23b   :  { %v444_v53 = vmul.f32 %v443_v51, %v429_v48  ;;  %v445_v54 = vmul.f32 %v443_v51, %v430_v49  ;;  %v446_v2 = vmul.f32 %v443_v51, %v431_v1  ;;  %v447_v3 = vmul.f32 %v443_v51, %v432_v0  ;;  %v3033_v0 = vld [vmem:[%s3829_s12] ss:$0 sm:$0xff] }
 0x23d   :  { %v451_v56 = vadd.f32 %v3031_v50, %v444_v53  ;;  %v452_v57 = vadd.f32 %v3031_v50, %v445_v54  ;;  %v453_v4 = vadd.f32 %v3031_v50, %v446_v2  ;;  %v454_v6 = vadd.f32 %v3031_v50, %v447_v3 }
 0x23f   :  { %v455_v60 = vmax.f32 %v451_v56, 0.0  ;;  %v456_v61 = vmax.f32 %v452_v57, 0.0  ;;  %v457_v7 = vmax.f32 %v453_v4, 0.0  ;;  %v458_v8 = vmax.f32 %v454_v6, 0.0 }
 0x241   :  { %v459_v63 = vpack.c.bf16 %v456_v61, %v455_v60  ;;  %v460_v9 = vpack.c.bf16 %v458_v8, %v457_v7 }
 0x243   :  { %537 = vmatmul.bf16.vlgmr.msra.gmra.mxu3 %v459_v63 }
 0x253   :  { %542 = vmatmul.bf16.gmra.mxu3 %v460_v9  ;;  %v3034_v9 = vld [vmem:[%s3830_s13] ss:$0 sm:$0xff] }
 0x27c   :  { %v3494_v33 = vpop.permute.xlu1 %565 }
 0x2c6   :  { %v538_v10 = vpop.f32.mrf.mxu3 }
 0x2c7   :  { %v539_v16 = vadd.f32 %v3032_v59, %v538_v10 }
 0x2c9   :  { %v568_v19 = vmul.f32 %v3482_v11, %v539_v16 }
 0x2cb   :  { %v583_v27 = vmul.f32 %v568_v19, %v568_v19 }
 0x2ce   :  { %v540_v5 = vpop.f32.mrf.mxu3 }
 0x2cf   :  { %v541_v12 = vadd.f32 %v3032_v59, %v540_v5 }
 0x2d1   :  { %v569_v18 = vmul.f32 %v3489_v14, %v541_v12 }
 0x2d3   :  { %v584_v23 = vmul.f32 %v569_v18, %v569_v18  ;;  %v574_v28 = vadd.f32 %v569_v18, %v568_v19 }
 0x2d5   :  { %v587_v34 = vadd.f32 %v584_v23, %v583_v27  ;;  %v2918_v27 = vld [vmem:[#allocation6 + $0x70] sm:$0xff] }
 0x2d6   :  { %v543_v15 = vpop.f32.mrf.mxu3 }
 0x2d7   :  { %v544_v17 = vadd.f32 %v3032_v59, %v543_v15 }
 0x2d9   :  { %v570_v20 = vmul.f32 %v3487_v13, %v544_v17 }
 0x2db   :  { %v585_v30 = vmul.f32 %v570_v20, %v570_v20  ;;  %v575_v35 = vadd.f32 %v574_v28, %v570_v20 }
 0x2dd   :  { %v588_v37 = vadd.f32 %v587_v34, %v585_v30 }
 0x2de   :  { %v545_v25 = vpop.f32.mrf.mxu3 }
 0x2df   :  { %v546_v32 = vadd.f32 %v3032_v59, %v545_v25 }
 0x2e1   :  { %v571_v36 = vmul.f32 %v3494_v33, %v546_v32 }
 0x2e3   :  { %v576_v38 = vadd.f32 %v575_v35, %v571_v36  ;;  %v586_v39 = vmul.f32 %v571_v36, %v571_v36 }
 0x2e5   :  { %v577_v40 = vrot.slane %v576_v38, 4  ;;  %v589_v41 = vadd.f32 %v588_v37, %v586_v39  ;;  %v2917_v37 = vld [vmem:[#allocation6 + $0x68] sm:$0xff] }
 0x2e7   :  { %v578_v42 = vadd.f32 %v577_v40, %v576_v38  ;;  %v590_v43 = vrot.slane %v589_v41, 4 }
 0x2e9   :  { %v579_v44 = vrot.slane %v578_v42, 2  ;;  %v591_v45 = vadd.f32 %v590_v43, %v589_v41  ;;  %v2916_v41 = vld [vmem:[#allocation6 + $0x60] sm:$0xff]  ;;  %v2915_v43 = vld [vmem:[#allocation6 + $0x58] sm:$0xff] }
 0x2eb   :  { %v580_v46 = vadd.f32 %v579_v44, %v578_v42  ;;  %v592_v47 = vrot.slane %v591_v45, 2  ;;  %v2914_v44 = vld [vmem:[#allocation6 + $0x50] sm:$0xff] }
 0x2ed   :  { %v581_v48 = vrot.slane %v580_v46, 1  ;;  %v593_v49 = vadd.f32 %v592_v47, %v591_v45  ;;  %v2913_v45 = vld [vmem:[#allocation6 + $0x48] sm:$0xff] }
 0x2ef   :  { %v582_v50 = vadd.f32 %v581_v48, %v580_v46  ;;  %v594_v51 = vrot.slane %v593_v49, 1  ;;  %v2912_v46 = vld [vmem:[#allocation6 + $0x40] sm:$0xff]  ;;  %v673_v48 = vstv %s672_s4 }
 0x2f1   :  { %v595_v52 = vadd.f32 %v594_v51, %v593_v49  ;;  %v596_v53 = vmul.f32 0.03125, %v582_v50 }
 0x2f3   :  { %v597_v54 = vmul.f32 0.03125, %v595_v52  ;;  %v598_v55 = vmul.f32 %v596_v53, %v596_v53  ;;  %v603_v63 = vsub.f32 %v571_v36, %v596_v53  ;;  %v602_v1 = vsub.f32 %v570_v20, %v596_v53 }
 0x2f4   :  { %v600_v2 = vsub.f32 %v568_v19, %v596_v53  ;;  %v601_v3 = vsub.f32 %v569_v18, %v596_v53  ;;  %v2919_v19 = vld [vmem:[#allocation6 + $0x78] sm:$0xff] }
 0x2f5   :  { %v599_v56 = vsub.f32 %v597_v54, %v598_v55  ;;  %v610_v7 = vmul.f32 %v3033_v0, %v603_v63  ;;  %v609_v8 = vmul.f32 %v3033_v0, %v602_v1  ;;  %754 = vmatpush.bf16.msrb.mxu0 %v2919_v19  ;;  %v2927_v1 = vld [vmem:[#allocation7 + $0x78] sm:$0xff] }
 0x2f6   :  { %v607_v10 = vmul.f32 %v3033_v0, %v600_v2  ;;  %v608_v5 = vmul.f32 %v3033_v0, %v601_v3  ;;  %912 = vmatpush.bf16.msrb.mxu2 %v2927_v1  ;;  %v3035_v2 = vld [vmem:[%s3824_s7 + $0x1] ss:$0 sm:$0xff]  ;;  %v2926_v3 = vld [vmem:[#allocation7 + $0x70] sm:$0xff] }
 0x2f7   :  { %v611_v57 = vadd.f32 1e-05, %v599_v56 }
 0x2f9   :  { %3055 = vrsqrt.f32 %v611_v57  ;;  %vm618_vm5 = vweird.f32 %v611_v57  ;;  %755 = vmatpush.bf16.msrb.mxu0 %v2918_v27 }
 0x2fa   :  { %913 = vmatpush.bf16.msrb.mxu2 %v2926_v3 }
 0x2fd   :  { %756 = vmatpush.bf16.msrb.mxu0 %v2917_v37 }
 0x2ff   :  { %v3056_v58 = vpop.eup %3055 }
 0x300   :  { %v613_v60 = vmul.f32 %v3056_v58, %v611_v57  ;;  %vm619_vm4 = vweird.f32 %v3056_v58 }
 0x301   :  { %vm620_vm6 = vmor %vm618_vm5, %vm619_vm4  ;;  %757 = vmatpush.bf16.msrb.mxu0 %v2916_v41 }
 0x302   :  { %v614_v61 = vmul.f32 %v3056_v58, %v613_v60 }
 0x304   :  { %v615_v62 = vmul.f32 0.5, %v614_v61 }
 0x305   :  { %758 = vmatpush.bf16.msrb.mxu0 %v2915_v43 }
 0x306   :  { %v616_v4 = vsub.f32 1.5, %v615_v62 }
 0x308   :  { %v617_v6 = vmul.f32 %v3056_v58, %v616_v4 }
 0x309   :  { %759 = vmatpush.bf16.msrb.mxu0 %v2914_v44 }
 0x30a   :  { %v621_v59 = vsel %vm620_vm6, %v3056_v58, %v617_v6 }
 0x30b   :  { %v625_v12 = vmul.f32 %v621_v59, %v610_v7  ;;  %v624_v15 = vmul.f32 %v621_v59, %v609_v8  ;;  %v622_v16 = vmul.f32 %v621_v59, %v607_v10  ;;  %v623_v17 = vmul.f32 %v621_v59, %v608_v5 }
 0x30d   :  { %v631_v18 = vadd.f32 %v3034_v9, %v624_v15  ;;  %v632_v20 = vadd.f32 %v3034_v9, %v625_v12  ;;  %v629_v23 = vadd.f32 %v3034_v9, %v622_v16  ;;  %v630_v25 = vadd.f32 %v3034_v9, %v623_v17  ;;  %760 = vmatpush.bf16.msrb.mxu0 %v2913_v45  ;;  %v2925_v9 = vld [vmem:[#allocation7 + $0x68] sm:$0xff]  ;;  %v2924_v15 = vld [vmem:[#allocation7 + $0x60] sm:$0xff] }
 0x30e   :  { %914 = vmatpush.bf16.msrb.mxu2 %v2925_v9 }
 0x30f   :  { %v635_v28 = vmax.f32 %v631_v18, 0.0  ;;  %v636_v30 = vmax.f32 %v632_v20, 0.0  ;;  %v633_v32 = vmax.f32 %v629_v23, 0.0  ;;  %v634_v34 = vmax.f32 %v630_v25, 0.0  ;;  %v2923_v20 = vld [vmem:[#allocation7 + $0x58] sm:$0xff] }
 0x311   :  { %v3504_v35 = vadd.f32 %v635_v28, %v3413_v21  ;;  %v3507_v36 = vadd.f32 %v636_v30, %v3415_v22  ;;  %v3512_v39 = vadd.f32 %v633_v32, %v3421_v26  ;;  %v3515_v40 = vadd.f32 %v634_v34, %v3417_v24  ;;  %761 = vmatpush.bf16.msrb.mxu0 %v2912_v46  ;;  %v2922_v32 = vld [vmem:[#allocation7 + $0x50] sm:$0xff] }
 0x312   :  { %915 = vmatpush.bf16.msrb.mxu2 %v2924_v15 }
 0x313   :  { %v651_v38 = vpack.c.bf16 %v3507_v36, %v3504_v35  ;;  %v650_v42 = vpack.c.bf16 %v3515_v40, %v3512_v39  ;;  %v674_v49 = vmul.f32 %v673_v48, %v3512_v39  ;;  %v675_v50 = vmul.f32 %v673_v48, %v3515_v40 }
 0x314   :  { %v676_v56 = vmul.f32 %v673_v48, %v3504_v35  ;;  %v677_v57 = vmul.f32 %v673_v48, %v3507_v36 }
 0x315   :  { %658 = vmatpush.bf16.msrb.mxu1 %v651_v38 }
 0x316   :  { %916 = vmatpush.bf16.msrb.mxu2 %v2923_v20 }
 0x319   :  { %659 = vmatpush.bf16.msrb.mxu1 %v650_v42  ;;  %v2921_v42 = vld [vmem:[#allocation7 + $0x48] sm:$0xff] }
 0x31a   :  { %917 = vmatpush.bf16.msrb.mxu2 %v2922_v32 }
 0x31c   :  { %2443 = vmatmul.msk.bf16.vlgmr.msrb.gmra.mxu1 %vm268_vm0, %v3428_v29 }
 0x31e   :  { %918 = vmatpush.bf16.msrb.mxu2 %v2921_v42 }
 0x32c   :  { %2444 = vmatmul.msk.bf16.gmra.mxu1 %vm268_vm0, %v3435_v31 }
 0x399   :  { %v661_v47 = vpop.f32.mrf.mxu1 }
 0x39a   :  { %v678_v52 = vadd.f32 %v674_v49, %v661_v47  ;;  %v2920_v47 = vld [vmem:[#allocation7 + $0x40] sm:$0xff] }
 0x39b   :  { %919 = vmatpush.bf16.msrb.mxu2 %v2920_v47 }
 0x3a1   :  { %v663_v51 = vpop.f32.mrf.mxu1 }
 0x3a2   :  { %v679_v53 = vadd.f32 %v675_v50, %v663_v51 }
 0x3a4   :  { %v682_v54 = vpack.c.bf16 %v679_v53, %v678_v52 }
 0x3a6   :  { %762 = vmatmul.bf16.vlgmr.msrb.gmra.mxu0 %v682_v54 }
 0x3a9   :  { %v666_v55 = vpop.f32.mrf.mxu1 }
 0x3aa   :  { %v680_v60 = vadd.f32 %v676_v56, %v666_v55 }
 0x3b1   :  { %v668_v58 = vpop.f32.mrf.mxu1 }
 0x3b2   :  { %v681_v61 = vadd.f32 %v677_v57, %v668_v58 }
 0x3b4   :  { %v683_v62 = vpack.c.bf16 %v681_v61, %v680_v60  ;;  %v3036_v61 = vld [vmem:[%s3825_s8 + $0x1] ss:$0 sm:$0xff] }
 0x3b6   :  { %767 = vmatmul.bf16.gmra.mxu0 %v683_v62 }
 0x423   :  { %v763_v63 = vpop.f32.mrf.mxu0 }
 0x424   :  { %v764_v7 = vadd.f32 %v3035_v2, %v763_v63 }
 0x426   :  { %v786_v5 = vmul.f32 %v764_v7, %v764_v7 }
 0x42b   :  { %v765_v0 = vpop.f32.mrf.mxu0 }
 0x42c   :  { %v766_v6 = vadd.f32 %v3035_v2, %v765_v0 }
 0x42e   :  { %v787_v10 = vmul.f32 %v766_v6, %v766_v6  ;;  %v777_v59 = vadd.f32 %v766_v6, %v764_v7 }
 0x430   :  { %v790_v17 = vadd.f32 %v787_v10, %v786_v5 }
 0x433   :  { %v768_v4 = vpop.f32.mrf.mxu0 }
 0x434   :  { %v3530_v8 = vadd.f32 %v3035_v2, %v768_v4  ;;  %v3037_v4 = vld [vmem:[%s3826_s9 + $0x1] ss:$0 sm:$0xff] }
 0x436   :  { %v788_v12 = vmul.f32 %v3530_v8, %v3530_v8  ;;  %v778_v19 = vadd.f32 %v777_v59, %v3530_v8 }
 0x438   :  { %v791_v23 = vadd.f32 %v790_v17, %v788_v12 }
 0x43b   :  { %v770_v16 = vpop.f32.mrf.mxu0 }
 0x43c   :  { %v771_v18 = vadd.f32 %v3035_v2, %v770_v16 }
 0x43e   :  { %v779_v25 = vadd.f32 %v778_v19, %v771_v18  ;;  %v789_v27 = vmul.f32 %v771_v18, %v771_v18 }
 0x440   :  { %v780_v28 = vrot.slane %v779_v25, 4  ;;  %v792_v30 = vadd.f32 %v791_v23, %v789_v27 }
 0x442   :  { %v781_v34 = vadd.f32 %v780_v28, %v779_v25  ;;  %v793_v37 = vrot.slane %v792_v30, 4 }
 0x444   :  { %v782_v38 = vrot.slane %v781_v34, 2  ;;  %v794_v41 = vadd.f32 %v793_v37, %v792_v30 }
 0x446   :  { %v783_v43 = vadd.f32 %v782_v38, %v781_v34  ;;  %v795_v44 = vrot.slane %v794_v41, 2 }
 0x448   :  { %v784_v45 = vrot.slane %v783_v43, 1  ;;  %v796_v46 = vadd.f32 %v795_v44, %v794_v41 }
 0x44a   :  { %v785_v48 = vadd.f32 %v784_v45, %v783_v43  ;;  %v797_v49 = vrot.slane %v796_v46, 1 }
 0x44c   :  { %v798_v50 = vadd.f32 %v797_v49, %v796_v46  ;;  %v799_v51 = vmul.f32 0.03125, %v785_v48 }
 0x44e   :  { %v800_v52 = vmul.f32 0.03125, %v798_v50  ;;  %v801_v53 = vmul.f32 %v799_v51, %v799_v51  ;;  %v803_v62 = vsub.f32 %v764_v7, %v799_v51  ;;  %v804_v63 = vsub.f32 %v766_v6, %v799_v51 }
 0x44f   :  { %v806_v15 = vsub.f32 %v771_v18, %v799_v51  ;;  %v805_v6 = vsub.f32 %v3530_v8, %v799_v51  ;;  %v3038_v18 = vld [vmem:[%s3828_s11 + $0x1] ss:$0 sm:$0xff] }
 0x450   :  { %v802_v54 = vsub.f32 %v800_v52, %v801_v53  ;;  %v810_v2 = vmul.f32 %v3036_v61, %v803_v62  ;;  %v811_v3 = vmul.f32 %v3036_v61, %v804_v63 }
 0x451   :  { %v813_v19 = vmul.f32 %v3036_v61, %v806_v15  ;;  %v812_v20 = vmul.f32 %v3036_v61, %v805_v6 }
 0x452   :  { %v814_v55 = vadd.f32 1e-05, %v802_v54 }
 0x454   :  { %3057 = vrsqrt.f32 %v814_v55  ;;  %vm821_vm8 = vweird.f32 %v814_v55 }
 0x45a   :  { %v3058_v56 = vpop.eup %3057 }
 0x45b   :  { %v816_v57 = vmul.f32 %v3058_v56, %v814_v55  ;;  %vm822_vm7 = vweird.f32 %v3058_v56 }
 0x45c   :  { %vm823_vm9 = vmor %vm821_vm8, %vm822_vm7 }
 0x45d   :  { %v817_v58 = vmul.f32 %v3058_v56, %v816_v57 }
 0x45f   :  { %v818_v60 = vmul.f32 0.5, %v817_v58 }
 0x461   :  { %v819_v0 = vsub.f32 1.5, %v818_v60 }
 0x463   :  { %v820_v1 = vmul.f32 %v3058_v56, %v819_v0 }
 0x465   :  { %v824_v9 = vsel %vm823_vm9, %v3058_v56, %v820_v1 }
 0x466   :  { %v825_v10 = vmul.f32 %v824_v9, %v810_v2  ;;  %v826_v5 = vmul.f32 %v824_v9, %v811_v3  ;;  %v827_v23 = vmul.f32 %v824_v9, %v812_v20  ;;  %v828_v25 = vmul.f32 %v824_v9, %v813_v19 }
 0x468   :  { %v832_v59 = vadd.f32 %v3037_v4, %v825_v10  ;;  %v833_v12 = vadd.f32 %v3037_v4, %v826_v5  ;;  %v834_v27 = vadd.f32 %v3037_v4, %v827_v23  ;;  %v835_v28 = vadd.f32 %v3037_v4, %v828_v25 }
 0x46a   :  { %v836_v16 = vmax.f32 %v832_v59, 0.0  ;;  %v837_v7 = vmax.f32 %v833_v12, 0.0  ;;  %v838_v30 = vmax.f32 %v834_v27, 0.0  ;;  %v839_v32 = vmax.f32 %v835_v28, 0.0 }
 0x46b   :  { %v247_v27 = vadd.f32 %v3417_v24, %v3421_v26 }
 0x46c   :  { %v840_v17 = vpack.c.bf16 %v837_v7, %v836_v16  ;;  %v841_v34 = vpack.c.bf16 %v839_v32, %v838_v30  ;;  %v3039_v32 = vld [vmem:[%s3829_s12 + $0x1] ss:$0 sm:$0xff] }
 0x46e   :  { %920 = vmatmul.bf16.vlgmr.msrb.gmra.mxu2 %v840_v17  ;;  %v641_v17 = vadd.f32 %v3515_v40, %v3512_v39 }
 0x470   :  { %v642_v25 = vadd.f32 %v641_v17, %v3504_v35 }
 0x47e   :  { %925 = vmatmul.bf16.gmra.mxu2 %v841_v34 }
 0x4f1   :  { %v921_v37 = vpop.f32.mrf.mxu2 }
 0x4f2   :  { %v922_v42 = vadd.f32 %v3038_v18, %v921_v37 }
 0x4f4   :  { %v931_v45 = vmul.f32 %v922_v42, %v3482_v11 }
 0x4f6   :  { %v948_v49 = vmul.f32 %v931_v45, %v931_v45 }
 0x4f9   :  { %v923_v38 = vpop.f32.mrf.mxu2 }
 0x4fa   :  { %v924_v41 = vadd.f32 %v3038_v18, %v923_v38 }
 0x4fc   :  { %v932_v44 = vmul.f32 %v924_v41, %v3489_v14 }
 0x4fe   :  { %v949_v47 = vmul.f32 %v932_v44, %v932_v44  ;;  %v939_v50 = vadd.f32 %v932_v44, %v931_v45 }
 0x500   :  { %v952_v53 = vadd.f32 %v949_v47, %v948_v49  ;;  %v3040_v47 = vld [vmem:[%s3830_s13 + $0x1] ss:$0 sm:$0xff] }
 0x501   :  { %v926_v8 = vpop.f32.mrf.mxu2 }
 0x502   :  { %v927_v43 = vadd.f32 %v3038_v18, %v926_v8  ;;  %v643_v8 = vadd.f32 %v642_v25, %v3507_v36 }
 0x504   :  { %v933_v46 = vmul.f32 %v927_v43, %v3487_v13 }
 0x506   :  { %v950_v51 = vmul.f32 %v933_v46, %v933_v46  ;;  %v940_v54 = vadd.f32 %v939_v50, %v933_v46 }
 0x508   :  { %v953_v56 = vadd.f32 %v952_v53, %v950_v51  ;;  %v2935_v53 = vld [vmem:[#allocation6 + $0xb8] sm:$0xff] }
 0x509   :  { %v928_v48 = vpop.f32.mrf.mxu2  ;;  %1119 = vmatpush.bf16.msra.mxu1 %v2935_v53  ;;  %v2943_v53 = vld [vmem:[#allocation7 + $0xb8] sm:$0xff] }
 0x50a   :  { %v929_v52 = vadd.f32 %v3038_v18, %v928_v48  ;;  %v248_v18 = vadd.f32 %v247_v27, %v3413_v21  ;;  %v644_v48 = vrot.slane %v643_v8, 4  ;;  %1277 = vmatpush.bf16.msra.mxu0 %v2943_v53 }
 0x50c   :  { %v934_v55 = vmul.f32 %v929_v52, %v3494_v33  ;;  %v249_v42 = vadd.f32 %v248_v18, %v3415_v22  ;;  %v2928_v18 = vld [vmem:[#allocation6 + $0x80] sm:$0xff] }
 0x50e   :  { %v941_v57 = vadd.f32 %v940_v54, %v934_v55  ;;  %v951_v58 = vmul.f32 %v934_v55, %v934_v55  ;;  %v250_v52 = vrot.slane %v249_v42, 4 }
 0x510   :  { %v942_v60 = vrot.slane %v941_v57, 4  ;;  %v954_v61 = vadd.f32 %v953_v56, %v951_v58  ;;  %v645_v58 = vadd.f32 %v644_v48, %v643_v8  ;;  %v1038_v8 = vstv %s1037_s29 }
 0x512   :  { %v943_v62 = vadd.f32 %v942_v60, %v941_v57  ;;  %v955_v63 = vrot.slane %v954_v61, 4  ;;  %v2934_v57 = vld [vmem:[#allocation6 + $0xb0] sm:$0xff] }
 0x513   :  { %1120 = vmatpush.bf16.msra.mxu1 %v2934_v57 }
 0x514   :  { %v944_v0 = vrot.slane %v943_v62, 2  ;;  %v956_v1 = vadd.f32 %v955_v63, %v954_v61 }
 0x516   :  { %v945_v2 = vadd.f32 %v944_v0, %v943_v62  ;;  %v957_v3 = vrot.slane %v956_v1, 2  ;;  %v251_v0 = vadd.f32 %v250_v52, %v249_v42 }
 0x518   :  { %v946_v4 = vrot.slane %v945_v2, 1  ;;  %v958_v9 = vadd.f32 %v957_v3, %v956_v1 }
 0x51a   :  { %v947_v10 = vadd.f32 %v946_v4, %v945_v2  ;;  %v959_v5 = vrot.slane %v958_v9, 1 }
 0x51c   :  { %v960_v59 = vadd.f32 %v959_v5, %v958_v9  ;;  %v961_v12 = vmul.f32 0.03125, %v947_v10  ;;  %v2933_v9 = vld [vmem:[#allocation6 + $0xa8] sm:$0xff] }
 0x51d   :  { %1121 = vmatpush.bf16.msra.mxu1 %v2933_v9  ;;  %v2940_v9 = vld [vmem:[#allocation7 + $0xa0] sm:$0xff] }
 0x51e   :  { %v962_v15 = vmul.f32 0.03125, %v960_v59  ;;  %v963_v16 = vmul.f32 %v961_v12, %v961_v12  ;;  %v968_v30 = vsub.f32 %v934_v55, %v961_v12  ;;  %v967_v34 = vsub.f32 %v933_v46, %v961_v12 }
 0x51f   :  { %v965_v37 = vsub.f32 %v931_v45, %v961_v12  ;;  %v966_v38 = vsub.f32 %v932_v44, %v961_v12  ;;  %v646_v59 = vrot.slane %v645_v58, 2  ;;  %v2932_v12 = vld [vmem:[#allocation6 + $0xa0] sm:$0xff] }
 0x520   :  { %v964_v7 = vsub.f32 %v962_v15, %v963_v16  ;;  %v975_v24 = vmul.f32 %v3039_v32, %v968_v30  ;;  %v974_v26 = vmul.f32 %v3039_v32, %v967_v34 }
 0x521   :  { %v972_v46 = vmul.f32 %v3039_v32, %v965_v37  ;;  %v973_v45 = vmul.f32 %v3039_v32, %v966_v38  ;;  %1122 = vmatpush.bf16.msra.mxu1 %v2932_v12  ;;  %v2929_v38 = vld [vmem:[#allocation6 + $0x88] sm:$0xff] }
 0x522   :  { %v976_v6 = vadd.f32 1e-05, %v964_v7 }
 0x524   :  { %3059 = vrsqrt.f32 %v976_v6  ;;  %vm983_vm11 = vweird.f32 %v976_v6 }
 0x52a   :  { %v3060_v19 = vpop.eup %3059 }
 0x52b   :  { %v978_v20 = vmul.f32 %v3060_v19, %v976_v6  ;;  %vm984_vm10 = vweird.f32 %v3060_v19  ;;  %v2931_v6 = vld [vmem:[#allocation6 + $0x98] sm:$0xff] }
 0x52c   :  { %vm985_vm12 = vmor %vm983_vm11, %vm984_vm10  ;;  %1123 = vmatpush.bf16.msra.mxu1 %v2931_v6 }
 0x52d   :  { %v979_v23 = vmul.f32 %v3060_v19, %v978_v20 }
 0x52f   :  { %v980_v28 = vmul.f32 0.5, %v979_v23 }
 0x531   :  { %v981_v41 = vsub.f32 1.5, %v980_v28 }
 0x533   :  { %v982_v43 = vmul.f32 %v3060_v19, %v981_v41 }
 0x535   :  { %v986_v44 = vsel %vm985_vm12, %v3060_v19, %v982_v43 }
 0x536   :  { %v990_v21 = vmul.f32 %v986_v44, %v975_v24  ;;  %v989_v49 = vmul.f32 %v986_v44, %v974_v26  ;;  %v987_v50 = vmul.f32 %v986_v44, %v972_v46  ;;  %v988_v51 = vmul.f32 %v986_v44, %v973_v45 }
 0x538   :  { %v996_v22 = vadd.f32 %v3040_v47, %v989_v49  ;;  %v997_v54 = vadd.f32 %v3040_v47, %v990_v21  ;;  %v994_v55 = vadd.f32 %v3040_v47, %v987_v50  ;;  %v995_v56 = vadd.f32 %v3040_v47, %v988_v51 }
 0x53a   :  { %v1000_v60 = vmax.f32 %v996_v22, 0.0  ;;  %v1001_v61 = vmax.f32 %v997_v54, 0.0  ;;  %v998_v62 = vmax.f32 %v994_v55, 0.0  ;;  %v999_v63 = vmax.f32 %v995_v56, 0.0  ;;  %v3041_v22 = vld [vmem:[%s3824_s7 + $0x2] ss:$0 sm:$0xff] }
 0x53b   :  { %v2942_v54 = vld [vmem:[#allocation7 + $0xb0] sm:$0xff] }
 0x53c   :  { %v3564_v1 = vadd.f32 %v1000_v60, %v3504_v35  ;;  %v3567_v2 = vadd.f32 %v1001_v61, %v3507_v36  ;;  %v3570_v3 = vadd.f32 %v998_v62, %v3512_v39  ;;  %v3573_v4 = vadd.f32 %v999_v63, %v3515_v40  ;;  %1278 = vmatpush.bf16.msra.mxu0 %v2942_v54  ;;  %v2941_v60 = vld [vmem:[#allocation7 + $0xa8] sm:$0xff]  ;;  %v2962_v54 = vld [vmem:[#allocation9 + $0x10] sm:$0xff] }
 0x53d   :  { %v252_v35 = vrot.slane %v251_v0, 2  ;;  %v647_v40 = vadd.f32 %v646_v59, %v645_v58 }
 0x53e   :  { %v1016_v10 = vpack.c.bf16 %v3567_v2, %v3564_v1  ;;  %v1006_v5 = vadd.f32 %v3573_v4, %v3570_v3  ;;  %v1015_v39 = vpack.c.bf16 %v3573_v4, %v3570_v3  ;;  %v1039_v42 = vmul.f32 %v1038_v8, %v3570_v3 }
 0x53f   :  { %v253_v16 = vadd.f32 %v252_v35, %v251_v0  ;;  %v648_v17 = vrot.slane %v647_v40, 1  ;;  %v1040_v43 = vmul.f32 %v1038_v8, %v3573_v4  ;;  %v1041_v45 = vmul.f32 %v1038_v8, %v3564_v1 }
 0x540   :  { %1023 = vmatpush.bf16.msrb.mxu3 %v1016_v10  ;;  %v1007_v36 = vadd.f32 %v1006_v5, %v3564_v1  ;;  %v1042_v44 = vmul.f32 %v1038_v8, %v3567_v2  ;;  %1279 = vmatpush.bf16.msra.mxu0 %v2941_v60 }
 0x541   :  { %v254_v20 = vrot.slane %v253_v16, 1  ;;  %v3585_v25 = vadd.f32 %v648_v17, %v647_v40 }
 0x542   :  { %v1008_v15 = vadd.f32 %v1007_v36, %v3567_v2  ;;  %v2939_v36 = vld [vmem:[#allocation7 + $0x98] sm:$0xff] }
 0x543   :  { %v3587_v28 = vadd.f32 %v254_v20, %v253_v16 }
 0x544   :  { %1024 = vmatpush.bf16.msrb.mxu3 %v1015_v39  ;;  %v1009_v7 = vrot.slane %v1008_v15, 4  ;;  %1280 = vmatpush.bf16.msra.mxu0 %v2940_v9 }
 0x545   :  { %v2137_v32 = vadd.f32 %v3585_v25, %v3587_v28 }
 0x546   :  { %v1010_v19 = vadd.f32 %v1009_v7, %v1008_v15  ;;  %v2938_v7 = vld [vmem:[#allocation7 + $0x90] sm:$0xff] }
 0x547   :  { %2516 = vmatmul.msk.bf16.vlgmr.msrb.gmra.mxu3 %vm268_vm0, %v3428_v29  ;;  %v2930_v29 = vld [vmem:[#allocation6 + $0x90] sm:$0xff] }
 0x548   :  { %v1011_v23 = vrot.slane %v1010_v19, 2  ;;  %1124 = vmatpush.bf16.msra.mxu1 %v2930_v29  ;;  %1281 = vmatpush.bf16.msra.mxu0 %v2939_v36 }
 0x54a   :  { %v1012_v27 = vadd.f32 %v1011_v23, %v1010_v19  ;;  %v2937_v23 = vld [vmem:[#allocation7 + $0x88] sm:$0xff] }
 0x54c   :  { %v1013_v30 = vrot.slane %v1012_v27, 1  ;;  %1125 = vmatpush.bf16.msra.mxu1 %v2929_v38  ;;  %1282 = vmatpush.bf16.msra.mxu0 %v2938_v7  ;;  %v2936_v38 = vld [vmem:[#allocation7 + $0x80] sm:$0xff] }
 0x54e   :  { %v3591_v34 = vadd.f32 %v1013_v30, %v1012_v27 }
 0x550   :  { %v3594_v37 = vadd.f32 %v2137_v32, %v3591_v34  ;;  %1126 = vmatpush.bf16.msra.mxu1 %v2928_v18  ;;  %1283 = vmatpush.bf16.msra.mxu0 %v2937_v23 }
 0x554   :  { %1284 = vmatpush.bf16.msra.mxu0 %v2936_v38 }
 0x557   :  { %2517 = vmatmul.msk.bf16.gmra.mxu3 %vm268_vm0, %v3435_v31 }
 0x5ca   :  { %v1026_v41 = vpop.f32.mrf.mxu3 }
 0x5cb   :  { %v1043_v26 = vadd.f32 %v1039_v42, %v1026_v41 }
 0x5d2   :  { %v1028_v24 = vpop.f32.mrf.mxu3 }
 0x5d3   :  { %v1044_v47 = vadd.f32 %v1040_v43, %v1028_v24 }
 0x5d5   :  { %v1047_v46 = vpack.c.bf16 %v1044_v47, %v1043_v26  ;;  %v2967_v26 = vld [vmem:[#allocation9 + $0x38] sm:$0xff] }
 0x5d6   :  { %2071 = vmatpush.bf16.msrb.mxu0 %v2967_v26 }
 0x5d7   :  { %1127 = vmatmul.bf16.vlgmr.msra.gmra.mxu1 %v1047_v46  ;;  %v2966_v46 = vld [vmem:[#allocation9 + $0x30] sm:$0xff] }
 0x5da   :  { %v1031_v31 = vpop.f32.mrf.mxu3  ;;  %2072 = vmatpush.bf16.msrb.mxu0 %v2966_v46 }
 0x5db   :  { %v1045_v21 = vadd.f32 %v1041_v45, %v1031_v31  ;;  %v2965_v45 = vld [vmem:[#allocation9 + $0x28] sm:$0xff] }
 0x5de   :  { %2073 = vmatpush.bf16.msrb.mxu0 %v2965_v45 }
 0x5e2   :  { %v1033_v48 = vpop.f32.mrf.mxu3 }
 0x5e3   :  { %v1046_v49 = vadd.f32 %v1042_v44, %v1033_v48  ;;  %v2964_v44 = vld [vmem:[#allocation9 + $0x20] sm:$0xff] }
 0x5e4   :  { %2074 = vmatpush.bf16.msrb.mxu0 %v2964_v44 }
 0x5e5   :  { %v1048_v50 = vpack.c.bf16 %v1046_v49, %v1045_v21 }
 0x5e7   :  { %1132 = vmatmul.bf16.gmra.mxu1 %v1048_v50  ;;  %v2963_v50 = vld [vmem:[#allocation9 + $0x18] sm:$0xff] }
 0x5e8   :  { %2075 = vmatpush.bf16.msrb.mxu0 %v2963_v50 }
 0x5ec   :  { %2076 = vmatpush.bf16.msrb.mxu0 %v2962_v54 }
 0x654   :  { %v1128_v51 = vpop.f32.mrf.mxu1 }
 0x655   :  { %v3607_v57 = vadd.f32 %v3041_v22, %v1128_v51 }
 0x657   :  { %v1151_v62 = vmul.f32 %v3607_v57, %v3607_v57 }
 0x65c   :  { %v1130_v52 = vpop.f32.mrf.mxu1 }
 0x65d   :  { %v3605_v56 = vadd.f32 %v3041_v22, %v1130_v52  ;;  %v3042_v52 = vld [vmem:[%s3825_s8 + $0x2] ss:$0 sm:$0xff] }
 0x65f   :  { %v1152_v61 = vmul.f32 %v3605_v56, %v3605_v56  ;;  %v1142_v63 = vadd.f32 %v3605_v56, %v3607_v57 }
 0x661   :  { %v1155_v5 = vadd.f32 %v1152_v61, %v1151_v62 }
 0x664   :  { %v1133_v55 = vpop.f32.mrf.mxu1 }
 0x665   :  { %v3609_v58 = vadd.f32 %v3041_v22, %v1133_v55 }
 0x667   :  { %v1153_v0 = vmul.f32 %v3609_v58, %v3609_v58  ;;  %v1143_v59 = vadd.f32 %v1142_v63, %v3609_v58  ;;  %v3043_v63 = vld [vmem:[%s3826_s9 + $0x2] ss:$0 sm:$0xff] }
 0x669   :  { %v1156_v12 = vadd.f32 %v1155_v5, %v1153_v0  ;;  %v2961_v0 = vld [vmem:[#allocation9 + $0x8] sm:$0xff] }
 0x66a   :  { %2077 = vmatpush.bf16.msrb.mxu0 %v2961_v0 }
 0x66c   :  { %v1135_v10 = vpop.f32.mrf.mxu1 }
 0x66d   :  { %v3620_v35 = vadd.f32 %v3041_v22, %v1135_v10 }
 0x66f   :  { %v1144_v39 = vadd.f32 %v1143_v59, %v3620_v35  ;;  %v1154_v40 = vmul.f32 %v3620_v35, %v3620_v35  ;;  %v2960_v59 = vld [vmem:[#allocation9] sm:$0xff] }
 0x670   :  { %2078 = vmatpush.bf16.msrb.mxu0 %v2960_v59 }
 0x671   :  { %v1145_v15 = vrot.slane %v1144_v39, 4  ;;  %v1157_v16 = vadd.f32 %v1156_v12, %v1154_v40 }
 0x673   :  { %v1146_v6 = vadd.f32 %v1145_v15, %v1144_v39  ;;  %v1158_v17 = vrot.slane %v1157_v16, 4 }
 0x675   :  { %v1147_v19 = vrot.slane %v1146_v6, 2  ;;  %v1159_v20 = vadd.f32 %v1158_v17, %v1157_v16 }
 0x677   :  { %v1148_v27 = vadd.f32 %v1147_v19, %v1146_v6  ;;  %v1160_v30 = vrot.slane %v1159_v20, 2 }
 0x679   :  { %v1149_v32 = vrot.slane %v1148_v27, 1  ;;  %v1161_v29 = vadd.f32 %v1160_v30, %v1159_v20 }
 0x67b   :  { %v1150_v18 = vadd.f32 %v1149_v32, %v1148_v27  ;;  %v1162_v41 = vrot.slane %v1161_v29, 1 }
 0x67d   :  { %v1163_v8 = vadd.f32 %v1162_v41, %v1161_v29  ;;  %v1164_v42 = vmul.f32 0.03125, %v1150_v18 }
 0x67f   :  { %v1165_v43 = vmul.f32 0.03125, %v1163_v8  ;;  %v1166_v24 = vmul.f32 %v1164_v42, %v1164_v42  ;;  %v1168_v53 = vsub.f32 %v3607_v57, %v1164_v42  ;;  %v1169_v22 = vsub.f32 %v3605_v56, %v1164_v42 }
 0x680   :  { %v1171_v36 = vsub.f32 %v3620_v35, %v1164_v42  ;;  %v1170_v40 = vsub.f32 %v3609_v58, %v1164_v42  ;;  %v1745_v35 = vpack.c.bf16 %v3587_v28, %v3587_v28  ;;  %v3044_v58 = vld [vmem:[%s3828_s11 + $0x2] ss:$0 sm:$0xff] }
 0x681   :  { %v1167_v47 = vsub.f32 %v1165_v43, %v1166_v24  ;;  %v1175_v61 = vmul.f32 %v3042_v52, %v1168_v53  ;;  %v1176_v62 = vmul.f32 %v3042_v52, %v1169_v22 }
 0x682   :  { %v1178_v16 = vmul.f32 %v3042_v52, %v1171_v36  ;;  %v1177_v7 = vmul.f32 %v3042_v52, %v1170_v40 }
 0x683   :  { %v1179_v31 = vadd.f32 1e-05, %v1167_v47 }
 0x685   :  { %3061 = vrsqrt.f32 %v1179_v31  ;;  %vm1186_vm14 = vweird.f32 %v1179_v31 }
 0x68b   :  { %v3062_v48 = vpop.eup %3061 }
 0x68c   :  { %v1181_v21 = vmul.f32 %v3062_v48, %v1179_v31  ;;  %vm1187_vm13 = vweird.f32 %v3062_v48 }
 0x68d   :  { %vm1188_vm15 = vmor %vm1186_vm14, %vm1187_vm13 }
 0x68e   :  { %v1182_v49 = vmul.f32 %v3062_v48, %v1181_v21 }
 0x690   :  { %v1183_v51 = vmul.f32 0.5, %v1182_v49 }
 0x692   :  { %v1184_v55 = vsub.f32 1.5, %v1183_v51 }
 0x694   :  { %v1185_v60 = vmul.f32 %v3062_v48, %v1184_v55 }
 0x696   :  { %v1189_v9 = vsel %vm1188_vm15, %v3062_v48, %v1185_v60 }
 0x697   :  { %v1190_v10 = vmul.f32 %v1189_v9, %v1175_v61  ;;  %v1191_v57 = vmul.f32 %v1189_v9, %v1176_v62  ;;  %v1192_v6 = vmul.f32 %v1189_v9, %v1177_v7  ;;  %v1193_v17 = vmul.f32 %v1189_v9, %v1178_v16 }
 0x699   :  { %v1197_v5 = vadd.f32 %v3043_v63, %v1190_v10  ;;  %v1198_v56 = vadd.f32 %v3043_v63, %v1191_v57  ;;  %v1199_v19 = vadd.f32 %v3043_v63, %v1192_v6  ;;  %v1200_v20 = vadd.f32 %v3043_v63, %v1193_v17 }
 0x69b   :  { %v1201_v12 = vmax.f32 %v1197_v5, 0.0  ;;  %v1202_v39 = vmax.f32 %v1198_v56, 0.0  ;;  %v1203_v23 = vmax.f32 %v1199_v19, 0.0  ;;  %v1204_v27 = vmax.f32 %v1200_v20, 0.0  ;;  %v3045_v20 = vld [vmem:[%s3829_s12 + $0x2] ss:$0 sm:$0xff] }
 0x69d   :  { %v1205_v15 = vpack.c.bf16 %v1202_v39, %v1201_v12  ;;  %v1206_v30 = vpack.c.bf16 %v1204_v27, %v1203_v23 }
 0x69f   :  { %1285 = vmatmul.bf16.vlgmr.msra.gmra.mxu0 %v1205_v15 }
 0x6af   :  { %1290 = vmatmul.bf16.gmra.mxu0 %v1206_v30 }
 0x6bf   :  { %2079 = vmatmul.bf16.vlgmr.msrb.gmra.mxu0 %v1745_v35 }
 0x71c   :  { %v1286_v32 = vpop.f32.mrf.mxu0 }
 0x71d   :  { %v1287_v41 = vadd.f32 %v3044_v58, %v1286_v32 }
 0x71f   :  { %v1296_v43 = vmul.f32 %v1287_v41, %v3482_v11 }
 0x721   :  { %v1313_v28 = vmul.f32 %v1296_v43, %v1296_v43 }
 0x724   :  { %v1288_v29 = vpop.f32.mrf.mxu0 }
 0x725   :  { %v1289_v38 = vadd.f32 %v3044_v58, %v1288_v29 }
 0x727   :  { %v1297_v42 = vmul.f32 %v1289_v38, %v3489_v14 }
 0x729   :  { %v1314_v26 = vmul.f32 %v1297_v42, %v1297_v42  ;;  %v1304_v46 = vadd.f32 %v1297_v42, %v1296_v43 }
 0x72b   :  { %v1317_v44 = vadd.f32 %v1314_v26, %v1313_v28 }
 0x72c   :  { %v1291_v18 = vpop.f32.mrf.mxu0 }
 0x72d   :  { %v1292_v8 = vadd.f32 %v3044_v58, %v1291_v18 }
 0x72f   :  { %v1298_v24 = vmul.f32 %v1292_v8, %v3487_v13 }
 0x731   :  { %v1315_v31 = vmul.f32 %v1298_v24, %v1298_v24  ;;  %v1305_v48 = vadd.f32 %v1304_v46, %v1298_v24 }
 0x733   :  { %v1318_v49 = vadd.f32 %v1317_v44, %v1315_v31 }
 0x734   :  { %v1293_v47 = vpop.f32.mrf.mxu0 }
 0x735   :  { %v1294_v45 = vadd.f32 %v3044_v58, %v1293_v47  ;;  %v3046_v58 = vld [vmem:[%s3830_s13 + $0x2] ss:$0 sm:$0xff] }
 0x737   :  { %v1299_v21 = vmul.f32 %v1294_v45, %v3494_v33 }
 0x739   :  { %v1306_v50 = vadd.f32 %v1305_v48, %v1299_v21  ;;  %v1316_v51 = vmul.f32 %v1299_v21, %v1299_v21 }
 0x73b   :  { %v1307_v52 = vrot.slane %v1306_v50, 4  ;;  %v1319_v53 = vadd.f32 %v1318_v49, %v1316_v51 }
 0x73c   :  { %v3644_v22 = vpop.f32.mrf.mxu0 }
 0x73d   :  { %v1308_v54 = vadd.f32 %v1307_v52, %v1306_v50  ;;  %v1320_v55 = vrot.slane %v1319_v53, 4 }
 0x73f   :  { %v1309_v60 = vrot.slane %v1308_v54, 2  ;;  %v1321_v61 = vadd.f32 %v1320_v55, %v1319_v53 }
 0x741   :  { %v1310_v62 = vadd.f32 %v1309_v60, %v1308_v54  ;;  %v1322_v63 = vrot.slane %v1321_v61, 2  ;;  %v2975_v54 = vld [vmem:[#allocation9 + $0x78] sm:$0xff]  ;;  %v3069_v60 = vld [vmem:[%s3854_s25] sm:$0xff] }
 0x743   :  { %v1311_v0 = vrot.slane %v1310_v62, 1  ;;  %v1323_v9 = vadd.f32 %v1322_v63, %v1321_v61  ;;  %v2951_v61 = vld [vmem:[#allocation6 + $0xf8] sm:$0xff]  ;;  %v2973_v63 = vld [vmem:[#allocation9 + $0x68] sm:$0xff] }
 0x744   :  { %v2082_v10 = vpop.f32.mrf.mxu0  ;;  %1484 = vmatpush.bf16.msra.mxu3 %v2951_v61  ;;  %v3047_v61 = vld [vmem:[%s3824_s7 + $0x3] ss:$0 sm:$0xff]  ;;  %s3247_s7 = smov [#allocation13]  }
 0x745   :  { %v1312_v57 = vadd.f32 %v1311_v0, %v1310_v62  ;;  %v1324_v5 = vrot.slane %v1323_v9, 1  ;;  %v2950_v0 = vld [vmem:[#allocation6 + $0xf0] sm:$0xff] }
 0x747   :  { %v1325_v56 = vadd.f32 %v1324_v5, %v1323_v9  ;;  %v1326_v59 = vmul.f32 0.03125, %v1312_v57  ;;  %v2972_v57 = vld [vmem:[#allocation9 + $0x60] sm:$0xff]  ;;  %v2949_v5 = vld [vmem:[#allocation6 + $0xe8] sm:$0xff] }
 0x748   :  { %1485 = vmatpush.bf16.msra.mxu3 %v2950_v0 }
 0x749   :  { %v1327_v36 = vmul.f32 0.03125, %v1325_v56  ;;  %v1328_v12 = vmul.f32 %v1326_v59, %v1326_v59  ;;  %v1332_v17 = vsub.f32 %v1298_v24, %v1326_v59  ;;  %v1333_v19 = vsub.f32 %v1299_v21, %v1326_v59 }
 0x74a   :  { %v1330_v23 = vsub.f32 %v1296_v43, %v1326_v59  ;;  %v1331_v27 = vsub.f32 %v1297_v42, %v1326_v59 }
 0x74b   :  { %v1329_v39 = vsub.f32 %v1327_v36, %v1328_v12  ;;  %v1339_v32 = vmul.f32 %v3045_v20, %v1332_v17  ;;  %v1340_v29 = vmul.f32 %v3045_v20, %v1333_v19  ;;  %v2971_v36 = vld [vmem:[#allocation9 + $0x58] sm:$0xff]  ;;  %v2948_v12 = vld [vmem:[#allocation6 + $0xe0] sm:$0xff]  ;;  %v2946_v17 = vld [vmem:[#allocation6 + $0xd0] sm:$0xff] }
 0x74c   :  { %v1337_v38 = vmul.f32 %v3045_v20, %v1330_v23  ;;  %v1338_v18 = vmul.f32 %v3045_v20, %v1331_v27  ;;  %1486 = vmatpush.bf16.msra.mxu3 %v2949_v5  ;;  %v2945_v19 = vld [vmem:[#allocation6 + $0xc8] sm:$0xff]  ;;  %v2944_v20 = vld [vmem:[#allocation6 + $0xc0] sm:$0xff]  ;;  %v2983_v23 = vld [vmem:[#allocation9 + $0xb8] sm:$0xff] }
 0x74d   :  { %v1341_v40 = vadd.f32 1e-05, %v1329_v39  ;;  %v2982_v27 = vld [vmem:[#allocation9 + $0xb0] sm:$0xff] }
 0x74f   :  { %3063 = vrsqrt.f32 %v1341_v40  ;;  %vm1348_vm2 = vweird.f32 %v1341_v40 }
 0x750   :  { %1487 = vmatpush.bf16.msra.mxu3 %v2948_v12 }
 0x755   :  { %v3064_v15 = vpop.eup %3063 }
 0x756   :  { %v1343_v16 = vmul.f32 %v3064_v15, %v1341_v40  ;;  %vm1349_vm1 = vweird.f32 %v3064_v15  ;;  %v2970_v40 = vld [vmem:[#allocation9 + $0x50] sm:$0xff] }
 0x757   :  { %vm1350_vm3 = vmor %vm1348_vm2, %vm1349_vm1 }
 0x758   :  { %v1344_v7 = vmul.f32 %v3064_v15, %v1343_v16  ;;  %v3070_v16 = vld [vmem:[%s3854_s25 + $0x8] sm:$0xff]  ;;  %s2591_s25 = sld [smem:[#allocation2 + $0x3]] }
 0x75a   :  { %v1345_v6 = vmul.f32 0.5, %v1344_v7  ;;  %v2969_v7 = vld [vmem:[#allocation9 + $0x48] sm:$0xff] }
 0x75c   :  { %v1346_v30 = vsub.f32 1.5, %v1345_v6  ;;  %v2968_v6 = vld [vmem:[#allocation9 + $0x40] sm:$0xff] }
 0x75e   :  { %v1347_v35 = vmul.f32 %v3064_v15, %v1346_v30  ;;  %v2981_v30 = vld [vmem:[#allocation9 + $0xa8] sm:$0xff]  ;;  %s1402_s27 = sadd.f32 1.0, %s2591_s25 }
 0x760   :  { %v1351_v41 = vsel %vm1350_vm3, %v3064_v15, %v1347_v35  ;;  %v2947_v15 = vld [vmem:[#allocation6 + $0xd8] sm:$0xff]  ;;  %v2980_v35 = vld [vmem:[#allocation9 + $0xa0] sm:$0xff] }
 0x761   :  { %v1354_v8 = vmul.f32 %v1351_v41, %v1339_v32  ;;  %v1355_v24 = vmul.f32 %v1351_v41, %v1340_v29  ;;  %v1352_v26 = vmul.f32 %v1351_v41, %v1337_v38  ;;  %v1353_v47 = vmul.f32 %v1351_v41, %v1338_v18  ;;  %1488 = vmatpush.bf16.msra.mxu3 %v2947_v15  ;;  %v2979_v32 = vld [vmem:[#allocation9 + $0x98] sm:$0xff] }
 0x762   :  { %v1403_v38 = vstv %s1402_s27 }
 0x763   :  { %v1362_v43 = vadd.f32 %v3046_v58, %v1355_v24  ;;  %v1361_v42 = vadd.f32 %v3046_v58, %v1354_v8  ;;  %v1359_v28 = vadd.f32 %v3046_v58, %v1352_v26  ;;  %v1360_v46 = vadd.f32 %v3046_v58, %v1353_v47  ;;  %v2977_v58 = vld [vmem:[#allocation9 + $0x88] sm:$0xff]  ;;  %v2976_v24 = vld [vmem:[#allocation9 + $0x80] sm:$0xff] }
 0x765   :  { %v1366_v31 = vmax.f32 %v1362_v43, 0.0  ;;  %v1365_v45 = vmax.f32 %v1361_v42, 0.0  ;;  %v1363_v44 = vmax.f32 %v1359_v28, 0.0  ;;  %v1364_v48 = vmax.f32 %v1360_v46, 0.0  ;;  %1489 = vmatpush.bf16.msra.mxu3 %v2946_v17 }
 0x767   :  { %v3653_v21 = vadd.f32 %v1365_v45, %v3564_v1  ;;  %v3656_v49 = vadd.f32 %v1366_v31, %v3567_v2  ;;  %v3659_v50 = vadd.f32 %v1363_v44, %v3570_v3  ;;  %v3662_v51 = vadd.f32 %v1364_v48, %v3573_v4  ;;  %v2974_v3 = vld [vmem:[#allocation9 + $0x70] sm:$0xff] }
 0x769   :  { %v1381_v52 = vpack.c.bf16 %v3656_v49, %v3653_v21  ;;  %v1371_v53 = vadd.f32 %v3662_v51, %v3659_v50  ;;  %v1380_v2 = vpack.c.bf16 %v3662_v51, %v3659_v50  ;;  %1490 = vmatpush.bf16.msra.mxu3 %v2945_v19  ;;  %v1404_v18 = vmul.f32 %v1403_v38, %v3659_v50 }
 0x76a   :  { %v1405_v41 = vmul.f32 %v1403_v38, %v3662_v51  ;;  %v1406_v28 = vmul.f32 %v1403_v38, %v3653_v21  ;;  %v1407_v46 = vmul.f32 %v1403_v38, %v3656_v49 }
 0x76b   :  { %1388 = vmatpush.bf16.msra.mxu2 %v1381_v52  ;;  %v1372_v1 = vadd.f32 %v1371_v53, %v3653_v21  ;;  %v1830_v52 = vld [vmem:[%s3832_s15] sm:$0x1]  ;;  %s2317_s15 = sshll.u32 %s3247_s7, 4  ;;  %s2318_s15 = int_to_ptr.vmem [resolvable:$true] %s2317_s15 }
 0x76c   :  { %v2081_v53 = vadd.f32 %v3644_v22, %v1830_v52 }
 0x76d   :  { %v1373_v55 = vadd.f32 %v1372_v1, %v3656_v49  ;;  %1491 = vmatpush.bf16.msra.mxu3 %v2944_v20 }
 0x76f   :  { %1389 = vmatpush.bf16.msra.mxu2 %v1380_v2  ;;  %v1374_v4 = vrot.slane %v1373_v55, 4 }
 0x771   :  { %v1375_v62 = vadd.f32 %v1374_v4, %v1373_v55  ;;  %2097 = vmatpush.bf16.msrb.mxu3 %v2983_v23  ;;  %v1747_v55 = vpack.c.bf16 %v3591_v34, %v3591_v34  ;;  %v2954_v23 = vld [vmem:[#allocation7 + $0xd0] sm:$0xff] }
 0x772   :  { %2589 = vmatmul.msk.bf16.vlgmr.msra.gmra.mxu2 %vm268_vm0, %v3069_v60  ;;  %v2959_v60 = vld [vmem:[#allocation7 + $0xf8] sm:$0xff] }
 0x773   :  { %2084 = vmatpush.bf16.msrb.mxu2 %v2975_v54  ;;  %v1376_v9 = vrot.slane %v1375_v62, 2  ;;  %1642 = vmatpush.bf16.msrb.mxu1 %v2959_v60  ;;  %v3048_v60 = vld [vmem:[%s3825_s8 + $0x3] ss:$0 sm:$0xff]  ;;  %s2319_s8 = sshll.u32 %s3838_s21, 4  ;;  %s2320_s8 = int_to_ptr.hbm [resolvable:$true] %s2319_s8 }
 0x775   :  { %v1377_v10 = vadd.f32 %v1376_v9, %v1375_v62  ;;  %2098 = vmatpush.bf16.msrb.mxu3 %v2982_v27  ;;  %v2958_v62 = vld [vmem:[#allocation7 + $0xf0] sm:$0xff] }
 0x777   :  { %2085 = vmatpush.bf16.msrb.mxu2 %v2974_v3  ;;  %v1378_v56 = vrot.slane %v1377_v10, 1  ;;  %1643 = vmatpush.bf16.msrb.mxu1 %v2958_v62 }
 0x779   :  { %v3676_v59 = vadd.f32 %v1378_v56, %v1377_v10  ;;  %2099 = vmatpush.bf16.msrb.mxu3 %v2981_v30  ;;  %v2957_v10 = vld [vmem:[#allocation7 + $0xe8] sm:$0xff] }
 0x77b   :  { %2086 = vmatpush.bf16.msrb.mxu2 %v2973_v63  ;;  %v3680_v39 = vadd.f32 %v3594_v37, %v3676_v59  ;;  %v1746_v37 = vpack.c.bf16 %v3585_v25, %v3585_v25  ;;  %v2978_v25 = vld [vmem:[#allocation9 + $0x90] sm:$0xff]  ;;  %1644 = vmatpush.bf16.msrb.mxu1 %v2957_v10 }
 0x77d   :  { %2100 = vmatpush.bf16.msrb.mxu3 %v2980_v35 }
 0x77f   :  { %2087 = vmatpush.bf16.msrb.mxu2 %v2972_v57 }
 0x781   :  { %2101 = vmatpush.bf16.msrb.mxu3 %v2979_v32 }
 0x782   :  { %2590 = vmatmul.msk.bf16.gmra.mxu2 %vm268_vm0, %v3070_v16 }
 0x783   :  { %2088 = vmatpush.bf16.msrb.mxu2 %v2971_v36  ;;  %v2956_v36 = vld [vmem:[#allocation7 + $0xe0] sm:$0xff] }
 0x784   :  { %1645 = vmatpush.bf16.msrb.mxu1 %v2956_v36  ;;  %v2985_v36 = vld [vmem:[#allocation9 + $0xc8] sm:$0xff] }
 0x785   :  { %2102 = vmatpush.bf16.msrb.mxu3 %v2978_v25 }
 0x787   :  { %2089 = vmatpush.bf16.msrb.mxu2 %v2970_v40 }
 0x789   :  { %2103 = vmatpush.bf16.msrb.mxu3 %v2977_v58  ;;  %v2953_v58 = vld [vmem:[#allocation7 + $0xc8] sm:$0xff] }
 0x78b   :  { %2090 = vmatpush.bf16.msrb.mxu2 %v2969_v7  ;;  %v2955_v7 = vld [vmem:[#allocation7 + $0xd8] sm:$0xff] }
 0x78c   :  { %1646 = vmatpush.bf16.msrb.mxu1 %v2955_v7  ;;  %v2984_v7 = vld [vmem:[#allocation9 + $0xc0] sm:$0xff] }
 0x78d   :  { %2104 = vmatpush.bf16.msrb.mxu3 %v2976_v24  ;;  %v2952_v24 = vld [vmem:[#allocation7 + $0xc0] sm:$0xff] }
 0x78f   :  { %2091 = vmatpush.bf16.msrb.mxu2 %v2968_v6 }
 0x790   :  { %1647 = vmatpush.bf16.msrb.mxu1 %v2954_v23 }
 0x792   :  { %2092 = vmatmul.bf16.vlgmr.msrb.gmra.mxu2 %v1746_v37 }
 0x794   :  { %1648 = vmatpush.bf16.msrb.mxu1 %v2953_v58 }
 0x798   :  { %1649 = vmatpush.bf16.msrb.mxu1 %v2952_v24 }
 0x7f5   :  { %v1391_v29 = vpop.f32.mrf.mxu2 }
 0x7f6   :  { %v1408_v26 = vadd.f32 %v1404_v18, %v1391_v29 }
 0x7fd   :  { %v1393_v8 = vpop.f32.mrf.mxu2 }
 0x7fe   :  { %v1409_v47 = vadd.f32 %v1405_v41, %v1393_v8 }
 0x800   :  { %v1412_v43 = vpack.c.bf16 %v1409_v47, %v1408_v26 }
 0x802   :  { %1492 = vmatmul.bf16.vlgmr.msra.gmra.mxu3 %v1412_v43 }
 0x805   :  { %v1396_v42 = vpop.f32.mrf.mxu2 }
 0x806   :  { %v1410_v45 = vadd.f32 %v1406_v28, %v1396_v42 }
 0x80d   :  { %v1398_v31 = vpop.f32.mrf.mxu2 }
 0x80e   :  { %v1411_v44 = vadd.f32 %v1407_v46, %v1398_v31 }
 0x810   :  { %v1413_v48 = vpack.c.bf16 %v1411_v44, %v1410_v45  ;;  %v2991_v45 = vld [vmem:[#allocation9 + $0xf8] sm:$0xff] }
 0x811   :  { %2110 = vmatpush.bf16.msra.mxu1 %v2991_v45 }
 0x812   :  { %1497 = vmatmul.bf16.gmra.mxu3 %v1413_v48  ;;  %v2990_v48 = vld [vmem:[#allocation9 + $0xf0] sm:$0xff] }
 0x815   :  { %v2093_v54 = vpop.f32.mrf.mxu2  ;;  %2111 = vmatpush.bf16.msra.mxu1 %v2990_v48 }
 0x816   :  { %v2094_v1 = vadd.f32 %v2093_v54, %v2081_v53  ;;  %v2989_v53 = vld [vmem:[#allocation9 + $0xe8] sm:$0xff]  ;;  %v2988_v54 = vld [vmem:[#allocation9 + $0xe0] sm:$0xff] }
 0x819   :  { %2112 = vmatpush.bf16.msra.mxu1 %v2989_v53 }
 0x81d   :  { %v2095_v2 = vpop.f32.mrf.mxu2  ;;  %2113 = vmatpush.bf16.msra.mxu1 %v2988_v54 }
 0x822   :  { %2105 = vmatmul.bf16.vlgmr.msrb.gmra.mxu3 %v1747_v55 }
 0x885   :  { %v1493_v3 = vpop.f32.mrf.mxu3 }
 0x886   :  { %v3703_v22 = vadd.f32 %v3047_v61, %v1493_v3  ;;  %v2987_v3 = vld [vmem:[#allocation9 + $0xd8] sm:$0xff] }
 0x887   :  { %2114 = vmatpush.bf16.msra.mxu1 %v2987_v3 }
 0x888   :  { %v1516_v57 = vmul.f32 %v3703_v22, %v3703_v22 }
 0x88d   :  { %v1495_v4 = vpop.f32.mrf.mxu3 }
 0x88e   :  { %v3701_v0 = vadd.f32 %v3047_v61, %v1495_v4 }
 0x890   :  { %v1517_v34 = vmul.f32 %v3701_v0, %v3701_v0  ;;  %v1507_v5 = vadd.f32 %v3701_v0, %v3703_v22 }
 0x892   :  { %v1520_v40 = vadd.f32 %v1517_v34, %v1516_v57 }
 0x895   :  { %v1498_v63 = vpop.f32.mrf.mxu3 }
 0x896   :  { %v3705_v9 = vadd.f32 %v3047_v61, %v1498_v63  ;;  %v2986_v63 = vld [vmem:[#allocation9 + $0xd0] sm:$0xff] }
 0x897   :  { %2115 = vmatpush.bf16.msra.mxu1 %v2986_v63 }
 0x898   :  { %v1518_v56 = vmul.f32 %v3705_v9, %v3705_v9  ;;  %v1508_v15 = vadd.f32 %v1507_v5, %v3705_v9 }
 0x89a   :  { %v1521_v6 = vadd.f32 %v1520_v40, %v1518_v56  ;;  %v3049_v56 = vld [vmem:[%s3826_s9 + $0x3] ss:$0 sm:$0xff] }
 0x89b   :  { %2116 = vmatpush.bf16.msra.mxu1 %v2985_v36 }
 0x89d   :  { %v1500_v12 = vpop.f32.mrf.mxu3 }
 0x89e   :  { %v3716_v16 = vadd.f32 %v3047_v61, %v1500_v12 }
 0x89f   :  { %2117 = vmatpush.bf16.msra.mxu1 %v2984_v7 }
 0x8a0   :  { %v1509_v37 = vadd.f32 %v1508_v15, %v3716_v16  ;;  %v1519_v17 = vmul.f32 %v3716_v16, %v3716_v16 }
 0x8a2   :  { %v1510_v19 = vrot.slane %v1509_v37, 4  ;;  %v1522_v20 = vadd.f32 %v1521_v6, %v1519_v17 }
 0x8a4   :  { %v1511_v27 = vadd.f32 %v1510_v19, %v1509_v37  ;;  %v1523_v30 = vrot.slane %v1522_v20, 4 }
 0x8a5   :  { %v2106_v35 = vpop.f32.mrf.mxu3 }
 0x8a6   :  { %v1512_v32 = vrot.slane %v1511_v27, 2  ;;  %v1524_v29 = vadd.f32 %v1523_v30, %v1522_v20  ;;  %v3721_v25 = vadd.f32 %v2106_v35, %v2094_v1 }
 0x8a8   :  { %v1513_v38 = vadd.f32 %v1512_v32, %v1511_v27  ;;  %v1525_v18 = vrot.slane %v1524_v29, 2 }
 0x8aa   :  { %v1514_v41 = vrot.slane %v1513_v38, 1  ;;  %v1526_v8 = vadd.f32 %v1525_v18, %v1524_v29 }
 0x8ac   :  { %v1515_v26 = vadd.f32 %v1514_v41, %v1513_v38  ;;  %v1527_v47 = vrot.slane %v1526_v8, 1 }
 0x8ad   :  { %v2108_v43 = vpop.f32.mrf.mxu3 }
 0x8ae   :  { %v1528_v42 = vadd.f32 %v1527_v47, %v1526_v8  ;;  %v1529_v28 = vmul.f32 0.03125, %v1515_v26 }
 0x8b0   :  { %v1530_v46 = vmul.f32 0.03125, %v1528_v42  ;;  %v1531_v31 = vmul.f32 %v1529_v28, %v1529_v28  ;;  %v1533_v61 = vsub.f32 %v3703_v22, %v1529_v28  ;;  %v1534_v62 = vsub.f32 %v3701_v0, %v1529_v28 }
 0x8b1   :  { %v1536_v6 = vsub.f32 %v3716_v16, %v1529_v28  ;;  %v1535_v19 = vsub.f32 %v3705_v9, %v1529_v28  ;;  %v1748_v16 = vpack.c.bf16 %v3676_v59, %v3676_v59  ;;  %v3050_v9 = vld [vmem:[%s3828_s11 + $0x3] ss:$0 sm:$0xff] }
 0x8b2   :  { %v1532_v44 = vsub.f32 %v1530_v46, %v1531_v31  ;;  %v1540_v57 = vmul.f32 %v3048_v60, %v1533_v61  ;;  %v1541_v5 = vmul.f32 %v3048_v60, %v1534_v62  ;;  %v2999_v62 = vld [vmem:[#allocation9 + $0x138] sm:$0xff] }
 0x8b3   :  { %v1543_v23 = vmul.f32 %v3048_v60, %v1536_v6  ;;  %v1542_v27 = vmul.f32 %v3048_v60, %v1535_v19  ;;  %2123 = vmatpush.bf16.msra.mxu0 %v2999_v62  ;;  %v3005_v6 = vld [vmem:[%s3833_s16 + $0x28] sm:$0xff] }
 0x8b4   :  { %v1544_v52 = vadd.f32 1e-05, %v1532_v44 }
 0x8b6   :  { %3065 = vrsqrt.f32 %v1544_v52  ;;  %vm1551_vm4 = vweird.f32 %v1544_v52 }
 0x8bc   :  { %v3066_v1 = vpop.eup %3065 }
 0x8bd   :  { %v1546_v2 = vmul.f32 %v3066_v1, %v1544_v52  ;;  %vm1552_vm0 = vweird.f32 %v3066_v1 }
 0x8be   :  { %vm1553_vm5 = vmor %vm1551_vm4, %vm1552_vm0 }
 0x8bf   :  { %v1547_v55 = vmul.f32 %v3066_v1, %v1546_v2 }
 0x8c1   :  { %v1548_v4 = vmul.f32 0.5, %v1547_v55 }
 0x8c3   :  { %v1549_v10 = vsub.f32 1.5, %v1548_v4 }
 0x8c5   :  { %v1550_v34 = vmul.f32 %v3066_v1, %v1549_v10 }
 0x8c7   :  { %v1554_v12 = vsel %vm1553_vm5, %v3066_v1, %v1550_v34 }
 0x8c8   :  { %v1555_v40 = vmul.f32 %v1554_v12, %v1540_v57  ;;  %v1556_v22 = vmul.f32 %v1554_v12, %v1541_v5  ;;  %v1557_v30 = vmul.f32 %v1554_v12, %v1542_v27  ;;  %v1558_v35 = vmul.f32 %v1554_v12, %v1543_v23  ;;  %v2998_v5 = vld [vmem:[#allocation9 + $0x130] sm:$0xff]  ;;  %v2995_v27 = vld [vmem:[#allocation9 + $0x118] sm:$0xff] }
 0x8c9   :  { %2124 = vmatpush.bf16.msra.mxu0 %v2998_v5 }
 0x8ca   :  { %v1562_v15 = vadd.f32 %v3049_v56, %v1555_v40  ;;  %v1563_v0 = vadd.f32 %v3049_v56, %v1556_v22  ;;  %v1564_v32 = vadd.f32 %v3049_v56, %v1557_v30  ;;  %v1565_v29 = vadd.f32 %v3049_v56, %v1558_v35  ;;  %v3003_v35 = vld [vmem:[%s3833_s16 + $0x18] sm:$0xff] }
 0x8cc   :  { %v1566_v37 = vmax.f32 %v1562_v15, 0.0  ;;  %v1567_v17 = vmax.f32 %v1563_v0, 0.0  ;;  %v1568_v58 = vmax.f32 %v1564_v32, 0.0  ;;  %v1569_v38 = vmax.f32 %v1565_v29, 0.0  ;;  %v2997_v15 = vld [vmem:[#allocation9 + $0x128] sm:$0xff]  ;;  %v2994_v32 = vld [vmem:[#allocation9 + $0x110] sm:$0xff] }
 0x8cd   :  { %2125 = vmatpush.bf16.msra.mxu0 %v2997_v15  ;;  %v3002_v29 = vld [vmem:[%s3833_s16 + $0x10] sm:$0xff] }
 0x8ce   :  { %v1570_v20 = vpack.c.bf16 %v1567_v17, %v1566_v37  ;;  %v1571_v18 = vpack.c.bf16 %v1569_v38, %v1568_v58  ;;  %v2996_v37 = vld [vmem:[#allocation9 + $0x120] sm:$0xff]  ;;  %v2993_v58 = vld [vmem:[#allocation9 + $0x108] sm:$0xff] }
 0x8d0   :  { %1650 = vmatmul.bf16.vlgmr.msrb.gmra.mxu1 %v1570_v20  ;;  %v3004_v20 = vld [vmem:[%s3833_s16 + $0x20] sm:$0xff] }
 0x8d1   :  { %2126 = vmatpush.bf16.msra.mxu0 %v2996_v37 }
 0x8d5   :  { %2127 = vmatpush.bf16.msra.mxu0 %v2995_v27 }
 0x8d9   :  { %2128 = vmatpush.bf16.msra.mxu0 %v2994_v32 }
 0x8dd   :  { %2129 = vmatpush.bf16.msra.mxu0 %v2993_v58 }
 0x8e0   :  { %1655 = vmatmul.bf16.gmra.mxu1 %v1571_v18  ;;  %v3001_v18 = vld [vmem:[%s3833_s16 + $0x8] sm:$0xff] }
 0x8f0   :  { %2118 = vmatmul.bf16.vlgmr.msra.gmra.mxu1 %v1748_v16 }
 0x94d   :  { %v1651_v41 = vpop.f32.mrf.mxu1 }
 0x94e   :  { %v1652_v47 = vadd.f32 %v3050_v9, %v1651_v41  ;;  %v2992_v41 = vld [vmem:[#allocation9 + $0x100] sm:$0xff] }
 0x94f   :  { %2130 = vmatpush.bf16.msra.mxu0 %v2992_v41 }
 0x950   :  { %v3742_v28 = vmul.f32 %v1652_v47, %v3482_v11 }
 0x952   :  { %v1678_v45 = vmul.f32 %v3742_v28, %v3742_v28 }
 0x955   :  { %v1653_v8 = vpop.f32.mrf.mxu1 }
 0x956   :  { %v1654_v24 = vadd.f32 %v3050_v9, %v1653_v8 }
 0x958   :  { %v3739_v42 = vmul.f32 %v1654_v24, %v3489_v14 }
 0x95a   :  { %v1679_v59 = vmul.f32 %v3739_v42, %v3739_v42  ;;  %v1669_v44 = vadd.f32 %v3739_v42, %v3742_v28 }
 0x95c   :  { %v1682_v52 = vadd.f32 %v1679_v59, %v1678_v45 }
 0x95d   :  { %v1656_v26 = vpop.f32.mrf.mxu1 }
 0x95e   :  { %v1657_v43 = vadd.f32 %v3050_v9, %v1656_v26 }
 0x960   :  { %v3745_v46 = vmul.f32 %v1657_v43, %v3487_v13 }
 0x962   :  { %v1680_v14 = vmul.f32 %v3745_v46, %v3745_v46  ;;  %v1670_v11 = vadd.f32 %v1669_v44, %v3745_v46 }
 0x964   :  { %v1683_v53 = vadd.f32 %v1682_v52, %v1680_v14 }
 0x965   :  { %v1658_v31 = vpop.f32.mrf.mxu1 }
 0x966   :  { %v1659_v48 = vadd.f32 %v3050_v9, %v1658_v31  ;;  %v3000_v9 = vld [vmem:[%s3833_s16] sm:$0xff] }
 0x967   :  { %v3051_v31 = vld [vmem:[%s3829_s12 + $0x3] ss:$0 sm:$0xff] }
 0x968   :  { %v3757_v13 = vmul.f32 %v1659_v48, %v3494_v33  ;;  %v3007_v33 = vld [vmem:[%s3833_s16 + $0x38] sm:$0xff] }
 0x969   :  { %2207 = vmatpush.bf16.msra.mxu2 %v3007_v33  ;;  %v3013_v33 = vld [vmem:[#allocation10 + $0x28] sm:$0xff] }
 0x96a   :  { %v1671_v54 = vadd.f32 %v1670_v11, %v3757_v13  ;;  %v1681_v1 = vmul.f32 %v3757_v13, %v3757_v13 }
 0x96c   :  { %v1672_v2 = vrot.slane %v1671_v54, 4  ;;  %v1684_v55 = vadd.f32 %v1683_v53, %v1681_v1 }
 0x96d   :  { %v2119_v3 = vpop.f32.mrf.mxu1 }
 0x96e   :  { %v1673_v4 = vadd.f32 %v1672_v2, %v1671_v54  ;;  %v1685_v60 = vrot.slane %v1684_v55, 4  ;;  %v3763_v61 = vadd.f32 %v2119_v3, %v3721_v25  ;;  %v3006_v25 = vld [vmem:[%s3833_s16 + $0x30] sm:$0xff] }
 0x96f   :  { %2208 = vmatpush.bf16.msra.mxu2 %v3006_v25  ;;  %v3014_v2 = vld [vmem:[#allocation10 + $0x30] sm:$0xff]  ;;  %v3012_v25 = vld [vmem:[#allocation10 + $0x20] sm:$0xff] }
 0x970   :  { %v1674_v63 = vrot.slane %v1673_v4, 2  ;;  %v1686_v10 = vadd.f32 %v1685_v60, %v1684_v55 }
 0x972   :  { %v1675_v34 = vadd.f32 %v1674_v63, %v1673_v4  ;;  %v1687_v57 = vrot.slane %v1686_v10, 2 }
 0x973   :  { %2209 = vmatpush.bf16.msra.mxu2 %v3005_v6 }
 0x974   :  { %v1676_v56 = vrot.slane %v1675_v34, 1  ;;  %v1688_v36 = vadd.f32 %v1687_v57, %v1686_v10 }
 0x975   :  { %v2121_v12 = vpop.f32.mrf.mxu1 }
 0x976   :  { %v1677_v40 = vadd.f32 %v1676_v56, %v1675_v34  ;;  %v1689_v22 = vrot.slane %v1688_v36, 1 }
 0x977   :  { %2210 = vmatpush.bf16.msra.mxu2 %v3004_v20  ;;  %v3010_v20 = vld [vmem:[#allocation10 + $0x10] sm:$0xff] }
 0x978   :  { %v1690_v0 = vadd.f32 %v1689_v22, %v1688_v36  ;;  %v1691_v7 = vmul.f32 0.03125, %v1677_v40 }
 0x97a   :  { %v1692_v17 = vmul.f32 0.03125, %v1690_v0  ;;  %v1693_v19 = vmul.f32 %v1691_v7, %v1691_v7  ;;  %v1695_v26 = vsub.f32 %v3742_v28, %v1691_v7  ;;  %v1696_v47 = vsub.f32 %v3739_v42, %v1691_v7  ;;  %v3052_v42 = vld [vmem:[%s3830_s13 + $0x3] ss:$0 sm:$0xff] }
 0x97b   :  { %2211 = vmatpush.bf16.msra.mxu2 %v3003_v35  ;;  %v1697_v43 = vsub.f32 %v3745_v46, %v1691_v7  ;;  %v1698_v59 = vsub.f32 %v3757_v13, %v1691_v7  ;;  %v3015_v46 = vld [vmem:[#allocation10 + $0x38] sm:$0xff]  ;;  %v2158_v35 = vld [vmem:[%s3834_s17] sm:$0x1]  ;;  %s3248_s17 = smov [#allocation12]  }
 0x97c   :  { %v1694_v23 = vsub.f32 %v1692_v17, %v1693_v19  ;;  %v1702_v14 = vmul.f32 %v3051_v31, %v1695_v26  ;;  %v1703_v48 = vmul.f32 %v3051_v31, %v1696_v47  ;;  %2287 = vmatpush.bf16.msra.mxu3 %v3015_v46  ;;  %s2306_s4 = sshll.u32 %s3248_s17, 4  ;;  %s2307_s4 = int_to_ptr.vmem [resolvable:$true] %s2306_s4 }
 0x97d   :  { %v1704_v52 = vmul.f32 %v3051_v31, %v1697_v43  ;;  %v1705_v28 = vmul.f32 %v3051_v31, %v1698_v59 }
 0x97e   :  { %v1706_v30 = vadd.f32 1e-05, %v1694_v23  ;;  %v3008_v23 = vld [vmem:[#allocation10] sm:$0xff] }
 0x97f   :  { %2212 = vmatpush.bf16.msra.mxu2 %v3002_v29 }
 0x980   :  { %3067 = vrsqrt.f32 %v1706_v30  ;;  %vm1713_vm7 = vweird.f32 %v1706_v30  ;;  %2288 = vmatpush.bf16.msra.mxu3 %v3014_v2 }
 0x983   :  { %2213 = vmatpush.bf16.msra.mxu2 %v3001_v18 }
 0x984   :  { %2289 = vmatpush.bf16.msra.mxu3 %v3013_v33 }
 0x986   :  { %v3068_v38 = vpop.eup %3067 }
 0x987   :  { %v1708_v16 = vmul.f32 %v3068_v38, %v1706_v30  ;;  %vm1714_vm6 = vweird.f32 %v3068_v38  ;;  %2214 = vmatpush.bf16.msra.mxu2 %v3000_v9 }
 0x988   :  { %vm1715_vm8 = vmor %vm1713_vm7, %vm1714_vm6  ;;  %2290 = vmatpush.bf16.msra.mxu3 %v3012_v25 }
 0x989   :  { %v1709_v8 = vmul.f32 %v3068_v38, %v1708_v16 }
 0x98b   :  { %v1710_v24 = vmul.f32 0.5, %v1709_v8 }
 0x98d   :  { %v1711_v45 = vsub.f32 1.5, %v1710_v24 }
 0x98f   :  { %v1712_v44 = vmul.f32 %v3068_v38, %v1711_v45 }
 0x991   :  { %v1716_v11 = vsel %vm1715_vm8, %v3068_v38, %v1712_v44 }
 0x992   :  { %v1717_v13 = vmul.f32 %v1716_v11, %v1702_v14  ;;  %v1718_v53 = vmul.f32 %v1716_v11, %v1703_v48  ;;  %v1719_v54 = vmul.f32 %v1716_v11, %v1704_v52  ;;  %v1720_v1 = vmul.f32 %v1716_v11, %v1705_v28 }
 0x994   :  { %v1724_v55 = vadd.f32 %v3052_v42, %v1717_v13  ;;  %v1725_v3 = vadd.f32 %v3052_v42, %v1718_v53  ;;  %v1726_v4 = vadd.f32 %v3052_v42, %v1719_v54  ;;  %v1727_v60 = vadd.f32 %v3052_v42, %v1720_v1 }
 0x996   :  { %v1728_v62 = vmax.f32 %v1724_v55, 0.0  ;;  %v1729_v63 = vmax.f32 %v1725_v3, 0.0  ;;  %v1730_v10 = vmax.f32 %v1726_v4, 0.0  ;;  %v1731_v34 = vmax.f32 %v1727_v60, 0.0 }
 0x998   :  { %v1732_v57 = vadd.f32 %v1728_v62, %v3659_v50  ;;  %v1733_v5 = vadd.f32 %v1729_v63, %v3662_v51  ;;  %v1734_v56 = vadd.f32 %v1730_v10, %v3653_v21  ;;  %v1735_v12 = vadd.f32 %v1731_v34, %v3656_v49  ;;  %v3011_v21 = vld [vmem:[#allocation10 + $0x18] sm:$0xff]  ;;  %v3009_v49 = vld [vmem:[#allocation10 + $0x8] sm:$0xff] }
 0x999   :  { %2291 = vmatpush.bf16.msra.mxu3 %v3011_v21 }
 0x99a   :  { %v1736_v36 = vadd.f32 %v1733_v5, %v1732_v57 }
 0x99c   :  { %v1737_v40 = vadd.f32 %v1736_v36, %v1734_v56 }
 0x99d   :  { %2292 = vmatpush.bf16.msra.mxu3 %v3010_v20 }
 0x99e   :  { %v1738_v22 = vadd.f32 %v1737_v40, %v1735_v12 }
 0x9a0   :  { %v1739_v15 = vrot.slane %v1738_v22, 4 }
 0x9a1   :  { %2293 = vmatpush.bf16.msra.mxu3 %v3009_v49 }
 0x9a2   :  { %v1740_v0 = vadd.f32 %v1739_v15, %v1738_v22 }
 0x9a4   :  { %v1741_v7 = vrot.slane %v1740_v0, 2 }
 0x9a5   :  { %2294 = vmatpush.bf16.msra.mxu3 %v3008_v23 }
 0x9a6   :  { %v1742_v6 = vadd.f32 %v1741_v7, %v1740_v0 }
 0x9a8   :  { %v1743_v37 = vrot.slane %v1742_v6, 1 }
 0x9aa   :  { %v1744_v17 = vadd.f32 %v1743_v37, %v1742_v6 }
 0x9ac   :  { %v1749_v19 = vpack.c.bf16 %v1744_v17, %v1744_v17  ;;  %v2140_v50 = vadd.f32 %v3680_v39, %v1744_v17 }
 0x9ae   :  { %2131 = vmatmul.bf16.vlgmr.msra.gmra.mxu0 %v1749_v19  ;;  %v2141_v51 = vpack.c.bf16 %v2140_v50, %v2140_v50 }
 0x9b0   :  { %2215 = vmatmul.bf16.vlgmr.msra.gmra.mxu2 %v2141_v51 }
 0xa2b   :  { %v2132_v27 = vpop.f32.mrf.mxu0 }
 0xa2c   :  { %v2133_v30 = vadd.f32 %v2132_v27, %v3763_v61  ;;  %v2238_v61 = vld [vmem:[%s3836_s19] sm:$0x1] }
 0xa2e   :  { %2136 = vst [vmem:[#allocation13] sm:$0x1] %v2133_v30 }
 0xa2f   :  { %2322 = dma.vmem_to_hbm [thread:$0]  %s2318_s15, 16, %s2320_s8, [#allocation14]  }
 0xa33   :  { %v2134_v39 = vpop.f32.mrf.mxu0  ;;  %v2216_v32 = vpop.f32.mrf.mxu2 }
 0xa34   :  { %v2217_v29 = vadd.f32 %v2216_v32, %v2158_v35 }
 0xa36   :  { %v2220_v58 = vmax.f32 %v2217_v29, 0.0 }
 0xa38   :  { %v2221_v38 = vpack.c.bf16 %v2220_v58, %v2220_v58 }
 0xa3a   :  { %2295 = vmatmul.bf16.vlgmr.msra.gmra.mxu3 %v2221_v38 }
 0xa3b   :  { %v2218_v18 = vpop.f32.mrf.mxu2 }
 0xabd   :  { %v2296_v16 = vpop.f32.mrf.mxu3 }
 0xabe   :  { %v2297_v41 = vadd.f32 %v2296_v16, %v2238_v61 }
 0xac0   :  { %2300 = vst [vmem:[#allocation12] sm:$0x1] %v2297_v41 }
 0xac1   :  { %2311 = dma.vmem_to_hbm [thread:$0]  %s2307_s4, 16, %s2309_s20, [#allocation4]  }
 0xac5   :  { %v2298_v8 = vpop.f32.mrf.mxu3 }
 0xac6   :  { %3235 = dma.done.wait [#allocation4], 16  }
 0xac7   :  { %3236 = vsyncadd [#allocation4], 4294967280 }
 0xac8   :  { %3237 = dma.done.wait [#allocation14], 16  }
 0xac9   :  { %3238 = vsyncadd [#allocation14], 4294967280 }
 0xaca   :  { %2331 = vsyncpa [#allocation3], 1 }
 0xacb   :  { %2332 = vsyncpa [#allocation8], 1 }
 0xacc   :  { %2333 = vsyncpa [#allocation11], 1 }
 0xacd   :  { %2334 = vsyncpa [#allocation4], 1 }
 0xace   :  { %2335 = vsyncpa [#allocation14], 1 }
 0xacf   :  { %2336 = vsyncpa [#allocation5], 1 }

</bundles_post_ra>
